<compile_context>
chip_gen: v7x
topology: tpu7x:2x2x1
jax: 0.10.0
libtpu: 0.0.40
codegen_flags: <defaults>
</compile_context>

<pallas_src>
import functools

import numpy as np

import jax
import jax.numpy as jnp
from jax.experimental import pallas as pl
from jax.experimental.pallas import tpu as pltpu

_EPS = 1e-5


def _round_up(n, m):
    return ((n + m - 1) // m) * m


# ----------------------------------------------------------------------------
# Kernel
# ----------------------------------------------------------------------------
def _deepset_ae_kernel(x_ref, pool_ref, w_ref, p_ref, out_ref, *,
                       n_phi_rows, n_sets, P, Bp, num_layers, aggregation,
                       set_size):
    """Whole autoencoder forward in one kernel invocation.

    x_ref   : (Rp, P)       f32   input rows (B*S rows live), lane-padded to P
    pool_ref: (Bp, Rp)      bf16  block-diagonal pooling matrix (zeros for 'max')
    w_ref   : (n_lin*P, P)  bf16  weight slab; layer li occupies rows [li*P,(li+1)*P)
    p_ref   : (3*n_lin, P)  f32   rows 3li / 3li+1 / 3li+2 = bias / gamma / beta
    out_ref : (2*Bp, P)     f32   rows [0:Bp) = embedding, rows [Bp:2Bp) = reconstruction
    """

    def linear(h, li):
        w = w_ref[li * P:(li + 1) * P, :]              # (P,P) bf16, tile-aligned slice
        b = p_ref[3 * li:3 * li + 1, :]                # (1,P) f32, read once per layer
        return jnp.dot(h.astype(jnp.bfloat16), w,
                       preferred_element_type=jnp.float32) + b

    def relu_bn(z, li, n_valid, row_mask):
        g = p_ref[3 * li + 1:3 * li + 2, :]            # (1,P)
        be = p_ref[3 * li + 2:3 * li + 3, :]           # (1,P)
        z = jnp.maximum(z, 0.0)
        zm = z if row_mask is None else z * row_mask   # exclude padded rows from stats
        inv_n = jnp.float32(1.0 / n_valid)
        mu = jnp.sum(zm, axis=0, keepdims=True) * inv_n
        ex2 = jnp.sum(zm * zm, axis=0, keepdims=True) * inv_n
        var = jnp.maximum(ex2 - mu * mu, 0.0)          # training-mode (biased) variance
        scale = g * jax.lax.rsqrt(var + _EPS)          # rsqrt -> EUP slot
        shift = be - mu * scale
        return z * scale + shift                       # single VPU multiply-add pass

    Rp = x_ref.shape[0]
    phi_mask = None
    if n_phi_rows != Rp:
        phi_mask = (jax.lax.broadcasted_iota(jnp.int32, (Rp, 1), 0)
                    < n_phi_rows).astype(jnp.float32)
    rho_mask = None
    if n_sets != Bp:
        rho_mask = (jax.lax.broadcasted_iota(jnp.int32, (Bp, 1), 0)
                    < n_sets).astype(jnp.float32)

    # ---- encoder phi: per-set-element MLP on (Rp, P) rows --------------------
    h = x_ref[...]
    for li in range(num_layers):
        h = relu_bn(linear(h, li), li, n_phi_rows, phi_mask)

    # ---- permutation-invariant aggregation over the set axis -----------------
    if aggregation in ('mean', 'sum'):
        # Pooling as an MXU matmul against a host-built block-diagonal matrix:
        # keeps h in its (sublane, lane) layout, no reshape / XLU reduction.
        h = jnp.dot(pool_ref[...], h.astype(jnp.bfloat16),
                    preferred_element_type=jnp.float32)
        if aggregation == 'mean':
            h = h * jnp.float32(1.0 / set_size)
    elif aggregation == 'max':
        hm = jnp.max(h[:n_sets * set_size].reshape(n_sets, set_size, P), axis=1)
        if Bp > n_sets:
            hm = jnp.concatenate(
                [hm, jnp.zeros((Bp - n_sets, P), jnp.float32)], axis=0)
        h = hm
    else:
        raise ValueError(f'Unknown aggregation: {aggregation}')

    # ---- encoder rho ----------------------------------------------------------
    for k in range(num_layers - 1):
        li = num_layers + k
        h = relu_bn(linear(h, li), li, n_sets, rho_mask)
    emb = linear(h, 2 * num_layers - 1)                # final rho layer: plain Linear

    # ---- decoder --------------------------------------------------------------
    d = emb
    for k in range(num_layers):
        li = 2 * num_layers + k
        d = relu_bn(linear(d, li), li, n_sets, rho_mask)
    rec = linear(d, 3 * num_layers)                    # final decoder layer: plain Linear

    # Single merged output slab; both slices are 8-sublane aligned full-width stores.
    out_ref[0:Bp, :] = emb
    out_ref[Bp:2 * Bp, :] = rec


# ----------------------------------------------------------------------------
# Parameter construction (PyTorch-style init) and slab packing
# ----------------------------------------------------------------------------
def init_model_params(key, input_dim, hidden_dim, embedding_dim, set_size,
                      num_layers=3):
    """Returns a list of (W[in,out], b[out], gamma|None, beta|None) per Linear layer,
    in execution order: encoder phi, encoder rho, decoder."""
    phi_dims = [input_dim] + [hidden_dim] * (num_layers - 1) + [hidden_dim]
    rho_dims = [hidden_dim] + [hidden_dim] * (num_layers - 1) + [embedding_dim]
    dec_dims = [embedding_dim] + [hidden_dim] * num_layers + [set_size * input_dim]

    specs = []  # (fan_in, fan_out, has_relu_bn)
    for i in range(len(phi_dims) - 1):
        specs.append((phi_dims[i], phi_dims[i + 1], True))
    for i in range(len(rho_dims) - 1):
        specs.append((rho_dims[i], rho_dims[i + 1], i < len(rho_dims) - 2))
    for i in range(len(dec_dims) - 1):
        specs.append((dec_dims[i], dec_dims[i + 1], i < len(dec_dims) - 2))

    keys = jax.random.split(key, len(specs))
    layers = []
    for (fi, fo, has_bn), k in zip(specs, keys):
        kw, kb = jax.random.split(k)
        bound = 1.0 / (fi ** 0.5)
        w = jax.random.uniform(kw, (fi, fo), jnp.float32, -bound, bound)
        b = jax.random.uniform(kb, (fo,), jnp.float32, -bound, bound)
        g = jnp.ones((fo,), jnp.float32) if has_bn else None
        be = jnp.zeros((fo,), jnp.float32) if has_bn else None
        layers.append((w, b, g, be))
    return layers


def pack_params(layers, P):
    """Pack per-layer params into a bf16 weight slab and an f32 bias/gamma/beta slab."""
    n = len(layers)
    w_slab = np.zeros((n * P, P), np.float32)
    p_slab = np.zeros((3 * n, P), np.float32)
    for i, (w, b, g, be) in enumerate(layers):
        fi, fo = w.shape
        w_slab[i * P:i * P + fi, :fo] = np.asarray(w)
        p_slab[3 * i, :fo] = np.asarray(b)
        if g is not None:
            p_slab[3 * i + 1, :fo] = np.asarray(g)
            p_slab[3 * i + 2, :fo] = np.asarray(be)
    return jnp.asarray(w_slab, jnp.bfloat16), jnp.asarray(p_slab, jnp.float32)


# ----------------------------------------------------------------------------
# Wrapper
# ----------------------------------------------------------------------------
def deep_set_autoencoder(x, w_slab, p_slab, *, embedding_dim, set_size, output_dim,
                         num_layers=3, aggregation='mean'):
    """x: (B, set_size, input_dim) -> (reconstructed (B,S,output_dim),
                                       embedding (B, embedding_dim))."""
    B, S, D = x.shape
    assert S == set_size
    P = w_slab.shape[-1]

    n_rows = B * S
    Rp = max(8, _round_up(n_rows, 8))      # phi rows, sublane-padded
    Bp = max(8, _round_up(B, 8))           # set rows,  sublane-padded

    x_flat = x.reshape(n_rows, D).astype(jnp.float32)
    x_pad = jnp.zeros((Rp, P), jnp.float32).at[:n_rows, :D].set(x_flat)

    # Pooling matrix built at trace time (constant for given B, S).
    pool = np.zeros((Bp, Rp), np.float32)
    if aggregation in ('mean', 'sum'):
        for b in range(B):
            pool[b, b * S:(b + 1) * S] = 1.0
    pool = jnp.asarray(pool, jnp.bfloat16)

    kernel = functools.partial(
        _deepset_ae_kernel, n_phi_rows=n_rows, n_sets=B, P=P, Bp=Bp,
        num_layers=num_layers, aggregation=aggregation, set_size=S)

    out = pl.pallas_call(
        kernel,
        out_shape=jax.ShapeDtypeStruct((2 * Bp, P), jnp.float32),
        in_specs=[pl.BlockSpec(memory_space=pltpu.MemorySpace.VMEM)] * 4,
        out_specs=pl.BlockSpec(memory_space=pltpu.MemorySpace.VMEM),
    )(x_pad, pool, w_slab, p_slab)

    embedding = out[:B, :embedding_dim]
    reconstructed = out[Bp:Bp + B, :set_size * output_dim].reshape(
        B, set_size, output_dim)
    return reconstructed, embedding


# ----------------------------------------------------------------------------
# Pure-JAX reference (mirrors module semantics; bf16 matmul operands like kernel)
# ----------------------------------------------------------------------------
def reference_forward(x, layers, *, embedding_dim, set_size, output_dim,
                      num_layers=3, aggregation='mean'):
    B, S, D = x.shape

    def linear(h, lay):
        w, b, _, _ = lay
        return jnp.dot(h.astype(jnp.bfloat16), w.astype(jnp.bfloat16),
                       preferred_element_type=jnp.float32) + b

    def relu_bn(z, lay):
        _, _, g, be = lay
        z = jnp.maximum(z, 0.0)
        mu = jnp.mean(z, axis=0, keepdims=True)
        var = jnp.mean((z - mu) ** 2, axis=0, keepdims=True)
        return (z - mu) * jax.lax.rsqrt(var + _EPS) * g + be

    h = x.reshape(B * S, D).astype(jnp.float32)
    idx = 0
    for _ in range(num_layers):
        h = relu_bn(linear(h, layers[idx]), layers[idx]); idx += 1
    h = h.reshape(B, S, -1)
    if aggregation == 'mean':
        h = jnp.mean(h, axis=1)
    elif aggregation == 'sum':
        h = jnp.sum(h, axis=1)
    else:
        h = jnp.max(h, axis=1)
    for _ in range(num_layers - 1):
        h = relu_bn(linear(h, layers[idx]), layers[idx]); idx += 1
    emb = linear(h, layers[idx]); idx += 1
    d = emb
    for _ in range(num_layers):
        d = relu_bn(linear(d, layers[idx]), layers[idx]); idx += 1
    rec = linear(d, layers[idx]).reshape(B, set_size, output_dim)
    return rec, emb


# ----------------------------------------------------------------------------
# Demo
# ----------------------------------------------------------------------------
if __name__ == "__main__":
    batch_size, set_size, input_dim = 6, 8, 16
    hidden_dim, embedding_dim, num_layers = 32, 16, 3
    aggregation = 'mean'

    key = jax.random.PRNGKey(0)
    k_x, k_p = jax.random.split(key)
    x = jax.random.normal(k_x, (batch_size, set_size, input_dim), jnp.float32)

    layers = init_model_params(k_p, input_dim, hidden_dim, embedding_dim,
                               set_size, num_layers)
    max_dim = max(input_dim, hidden_dim, embedding_dim, set_size * input_dim)
    P = 128 * ((max_dim + 127) // 128)
    w_slab, p_slab = pack_params(layers, P)

    reconstructed, embedding = deep_set_autoencoder(
        x, w_slab, p_slab,
        embedding_dim=embedding_dim, set_size=set_size, output_dim=input_dim,
        num_layers=num_layers, aggregation=aggregation)

    reconstructed = jax.block_until_ready(reconstructed)
    embedding = jax.block_until_ready(embedding)

    assert reconstructed.shape == (batch_size, set_size, input_dim)
    assert embedding.shape == (batch_size, embedding_dim)
    assert bool(jnp.all(jnp.isfinite(reconstructed)))
    assert bool(jnp.all(jnp.isfinite(embedding)))

    rec_ref, emb_ref = reference_forward(
        x, layers, embedding_dim=embedding_dim, set_size=set_size,
        output_dim=input_dim, num_layers=num_layers, aggregation=aggregation)
    rec_ref = jax.block_until_ready(rec_ref)
    emb_ref = jax.block_until_ready(emb_ref)
    assert bool(jnp.allclose(reconstructed, rec_ref, atol=1e-1, rtol=1e-1))
    assert bool(jnp.allclose(embedding, emb_ref, atol=1e-1, rtol=1e-1))

    print("KERNEL_OK")
</pallas_src>

<mosaic_0001>
module attributes {stable_mosaic.version = 11 : i64} {
  func.func @_deepset_ae_kernel(%arg0: memref<48x128xf32, #tpu.memory_space<vmem>>, %arg1: memref<8x48xbf16, #tpu.memory_space<vmem>>, %arg2: memref<1280x128xbf16, #tpu.memory_space<vmem>>, %arg3: memref<30x128xf32, #tpu.memory_space<vmem>>, %arg4: memref<16x128xf32, #tpu.memory_space<vmem>>) attributes {dimension_semantics = [], scalar_prefetch = 0 : i64, scratch_operands = 0 : i64, tpu.core_type = #tpu.core_type<tc>} {
    %0 = tpu.iota {dimensions = array<i32: 0>} : vector<8x1xi32>
    %c6_i32 = arith.constant 6 : i32
    %1 = vector.broadcast %c6_i32 : i32 to vector<8x1xi32>
    %2 = arith.cmpi slt, %0, %1 : vector<8x1xi32>
    %3 = arith.extui %2 : vector<8x1xi1> to vector<8x1xi32>
    %4 = arith.sitofp %3 : vector<8x1xi32> to vector<8x1xf32>
    %c0 = arith.constant 0 : index
    %c0_0 = arith.constant 0 : index
    %5 = vector.load %arg0[%c0, %c0_0] : memref<48x128xf32, #tpu.memory_space<vmem>>, vector<48x128xf32>
    %c0_1 = arith.constant 0 : index
    %c0_2 = arith.constant 0 : index
    %6 = vector.load %arg2[%c0_1, %c0_2] : memref<1280x128xbf16, #tpu.memory_space<vmem>>, vector<128x128xbf16>
    %c0_3 = arith.constant 0 : index
    %c0_4 = arith.constant 0 : index
    %7 = vector.load %arg3[%c0_3, %c0_4] : memref<30x128xf32, #tpu.memory_space<vmem>>, vector<1x128xf32>
    %8 = arith.truncf %5 : vector<48x128xf32> to vector<48x128xbf16>
    %cst = arith.constant dense<0.000000e+00> : vector<48x128xf32>
    %9 = tpu.matmul %8, %6, %cst {dimension_numbers = #tpu.dot_dimension_numbers<[1], [0], [0], [1], [0, 0, 1, 1], [], []>} : vector<48x128xbf16>, vector<128x128xbf16>, vector<48x128xf32> -> vector<48x128xf32>
    %10 = vector.broadcast %7 : vector<1x128xf32> to vector<48x128xf32>
    %11 = arith.addf %9, %10 : vector<48x128xf32>
    %c1 = arith.constant 1 : index
    %c0_5 = arith.constant 0 : index
    %12 = vector.load %arg3[%c1, %c0_5] : memref<30x128xf32, #tpu.memory_space<vmem>>, vector<1x128xf32>
    %c2 = arith.constant 2 : index
    %c0_6 = arith.constant 0 : index
    %13 = vector.load %arg3[%c2, %c0_6] : memref<30x128xf32, #tpu.memory_space<vmem>>, vector<1x128xf32>
    %cst_7 = arith.constant 0.000000e+00 : f32
    %14 = vector.broadcast %cst_7 : f32 to vector<48x128xf32>
    %15 = arith.maximumf %11, %14 : vector<48x128xf32>
    %cst_8 = arith.constant dense<0.000000e+00> : vector<128xf32>
    %16 = vector.multi_reduction <add>, %15, %cst_8 [0] : vector<48x128xf32> to vector<128xf32>
    %17 = vector.shape_cast %16 : vector<128xf32> to vector<1x128xf32>
    %cst_9 = arith.constant 0.020833334 : f32
    %18 = vector.broadcast %cst_9 : f32 to vector<1x128xf32>
    %19 = arith.mulf %17, %18 : vector<1x128xf32>
    %20 = arith.mulf %15, %15 : vector<48x128xf32>
    %cst_10 = arith.constant dense<0.000000e+00> : vector<128xf32>
    %21 = vector.multi_reduction <add>, %20, %cst_10 [0] : vector<48x128xf32> to vector<128xf32>
    %22 = vector.shape_cast %21 : vector<128xf32> to vector<1x128xf32>
    %cst_11 = arith.constant 0.020833334 : f32
    %23 = vector.broadcast %cst_11 : f32 to vector<1x128xf32>
    %24 = arith.mulf %22, %23 : vector<1x128xf32>
    %25 = arith.mulf %19, %19 : vector<1x128xf32>
    %26 = arith.subf %24, %25 : vector<1x128xf32>
    %cst_12 = arith.constant 0.000000e+00 : f32
    %27 = vector.broadcast %cst_12 : f32 to vector<1x128xf32>
    %28 = arith.maximumf %26, %27 : vector<1x128xf32>
    %cst_13 = arith.constant 9.99999974E-6 : f32
    %29 = vector.broadcast %cst_13 : f32 to vector<1x128xf32>
    %30 = arith.addf %28, %29 : vector<1x128xf32>
    %31 = math.rsqrt %30 : vector<1x128xf32>
    %32 = arith.mulf %12, %31 : vector<1x128xf32>
    %33 = arith.mulf %19, %32 : vector<1x128xf32>
    %34 = arith.subf %13, %33 : vector<1x128xf32>
    %35 = vector.broadcast %32 : vector<1x128xf32> to vector<48x128xf32>
    %36 = arith.mulf %15, %35 : vector<48x128xf32>
    %37 = vector.broadcast %34 : vector<1x128xf32> to vector<48x128xf32>
    %38 = arith.addf %36, %37 : vector<48x128xf32>
    %c128 = arith.constant 128 : index
    %c0_14 = arith.constant 0 : index
    %39 = vector.load %arg2[%c128, %c0_14] : memref<1280x128xbf16, #tpu.memory_space<vmem>>, vector<128x128xbf16>
    %c3 = arith.constant 3 : index
    %c0_15 = arith.constant 0 : index
    %40 = vector.load %arg3[%c3, %c0_15] : memref<30x128xf32, #tpu.memory_space<vmem>>, vector<1x128xf32>
    %41 = arith.truncf %38 : vector<48x128xf32> to vector<48x128xbf16>
    %cst_16 = arith.constant dense<0.000000e+00> : vector<48x128xf32>
    %42 = tpu.matmul %41, %39, %cst_16 {dimension_numbers = #tpu.dot_dimension_numbers<[1], [0], [0], [1], [0, 0, 1, 1], [], []>} : vector<48x128xbf16>, vector<128x128xbf16>, vector<48x128xf32> -> vector<48x128xf32>
    %43 = vector.broadcast %40 : vector<1x128xf32> to vector<48x128xf32>
    %44 = arith.addf %42, %43 : vector<48x128xf32>
    %c4 = arith.constant 4 : index
    %c0_17 = arith.constant 0 : index
    %45 = vector.load %arg3[%c4, %c0_17] : memref<30x128xf32, #tpu.memory_space<vmem>>, vector<1x128xf32>
    %c5 = arith.constant 5 : index
    %c0_18 = arith.constant 0 : index
    %46 = vector.load %arg3[%c5, %c0_18] : memref<30x128xf32, #tpu.memory_space<vmem>>, vector<1x128xf32>
    %cst_19 = arith.constant 0.000000e+00 : f32
    %47 = vector.broadcast %cst_19 : f32 to vector<48x128xf32>
    %48 = arith.maximumf %44, %47 : vector<48x128xf32>
    %cst_20 = arith.constant dense<0.000000e+00> : vector<128xf32>
    %49 = vector.multi_reduction <add>, %48, %cst_20 [0] : vector<48x128xf32> to vector<128xf32>
    %50 = vector.shape_cast %49 : vector<128xf32> to vector<1x128xf32>
    %cst_21 = arith.constant 0.020833334 : f32
    %51 = vector.broadcast %cst_21 : f32 to vector<1x128xf32>
    %52 = arith.mulf %50, %51 : vector<1x128xf32>
    %53 = arith.mulf %48, %48 : vector<48x128xf32>
    %cst_22 = arith.constant dense<0.000000e+00> : vector<128xf32>
    %54 = vector.multi_reduction <add>, %53, %cst_22 [0] : vector<48x128xf32> to vector<128xf32>
    %55 = vector.shape_cast %54 : vector<128xf32> to vector<1x128xf32>
    %cst_23 = arith.constant 0.020833334 : f32
    %56 = vector.broadcast %cst_23 : f32 to vector<1x128xf32>
    %57 = arith.mulf %55, %56 : vector<1x128xf32>
    %58 = arith.mulf %52, %52 : vector<1x128xf32>
    %59 = arith.subf %57, %58 : vector<1x128xf32>
    %cst_24 = arith.constant 0.000000e+00 : f32
    %60 = vector.broadcast %cst_24 : f32 to vector<1x128xf32>
    %61 = arith.maximumf %59, %60 : vector<1x128xf32>
    %cst_25 = arith.constant 9.99999974E-6 : f32
    %62 = vector.broadcast %cst_25 : f32 to vector<1x128xf32>
    %63 = arith.addf %61, %62 : vector<1x128xf32>
    %64 = math.rsqrt %63 : vector<1x128xf32>
    %65 = arith.mulf %45, %64 : vector<1x128xf32>
    %66 = arith.mulf %52, %65 : vector<1x128xf32>
    %67 = arith.subf %46, %66 : vector<1x128xf32>
    %68 = vector.broadcast %65 : vector<1x128xf32> to vector<48x128xf32>
    %69 = arith.mulf %48, %68 : vector<48x128xf32>
    %70 = vector.broadcast %67 : vector<1x128xf32> to vector<48x128xf32>
    %71 = arith.addf %69, %70 : vector<48x128xf32>
    %c256 = arith.constant 256 : index
    %c0_26 = arith.constant 0 : index
    %72 = vector.load %arg2[%c256, %c0_26] : memref<1280x128xbf16, #tpu.memory_space<vmem>>, vector<128x128xbf16>
    %c6 = arith.constant 6 : index
    %c0_27 = arith.constant 0 : index
    %73 = vector.load %arg3[%c6, %c0_27] : memref<30x128xf32, #tpu.memory_space<vmem>>, vector<1x128xf32>
    %74 = arith.truncf %71 : vector<48x128xf32> to vector<48x128xbf16>
    %cst_28 = arith.constant dense<0.000000e+00> : vector<48x128xf32>
    %75 = tpu.matmul %74, %72, %cst_28 {dimension_numbers = #tpu.dot_dimension_numbers<[1], [0], [0], [1], [0, 0, 1, 1], [], []>} : vector<48x128xbf16>, vector<128x128xbf16>, vector<48x128xf32> -> vector<48x128xf32>
    %76 = vector.broadcast %73 : vector<1x128xf32> to vector<48x128xf32>
    %77 = arith.addf %75, %76 : vector<48x128xf32>
    %c7 = arith.constant 7 : index
    %c0_29 = arith.constant 0 : index
    %78 = vector.load %arg3[%c7, %c0_29] : memref<30x128xf32, #tpu.memory_space<vmem>>, vector<1x128xf32>
    %c8 = arith.constant 8 : index
    %c0_30 = arith.constant 0 : index
    %79 = vector.load %arg3[%c8, %c0_30] : memref<30x128xf32, #tpu.memory_space<vmem>>, vector<1x128xf32>
    %cst_31 = arith.constant 0.000000e+00 : f32
    %80 = vector.broadcast %cst_31 : f32 to vector<48x128xf32>
    %81 = arith.maximumf %77, %80 : vector<48x128xf32>
    %cst_32 = arith.constant dense<0.000000e+00> : vector<128xf32>
    %82 = vector.multi_reduction <add>, %81, %cst_32 [0] : vector<48x128xf32> to vector<128xf32>
    %83 = vector.shape_cast %82 : vector<128xf32> to vector<1x128xf32>
    %cst_33 = arith.constant 0.020833334 : f32
    %84 = vector.broadcast %cst_33 : f32 to vector<1x128xf32>
    %85 = arith.mulf %83, %84 : vector<1x128xf32>
    %86 = arith.mulf %81, %81 : vector<48x128xf32>
    %cst_34 = arith.constant dense<0.000000e+00> : vector<128xf32>
    %87 = vector.multi_reduction <add>, %86, %cst_34 [0] : vector<48x128xf32> to vector<128xf32>
    %88 = vector.shape_cast %87 : vector<128xf32> to vector<1x128xf32>
    %cst_35 = arith.constant 0.020833334 : f32
    %89 = vector.broadcast %cst_35 : f32 to vector<1x128xf32>
    %90 = arith.mulf %88, %89 : vector<1x128xf32>
    %91 = arith.mulf %85, %85 : vector<1x128xf32>
    %92 = arith.subf %90, %91 : vector<1x128xf32>
    %cst_36 = arith.constant 0.000000e+00 : f32
    %93 = vector.broadcast %cst_36 : f32 to vector<1x128xf32>
    %94 = arith.maximumf %92, %93 : vector<1x128xf32>
    %cst_37 = arith.constant 9.99999974E-6 : f32
    %95 = vector.broadcast %cst_37 : f32 to vector<1x128xf32>
    %96 = arith.addf %94, %95 : vector<1x128xf32>
    %97 = math.rsqrt %96 : vector<1x128xf32>
    %98 = arith.mulf %78, %97 : vector<1x128xf32>
    %99 = arith.mulf %85, %98 : vector<1x128xf32>
    %100 = arith.subf %79, %99 : vector<1x128xf32>
    %101 = vector.broadcast %98 : vector<1x128xf32> to vector<48x128xf32>
    %102 = arith.mulf %81, %101 : vector<48x128xf32>
    %103 = vector.broadcast %100 : vector<1x128xf32> to vector<48x128xf32>
    %104 = arith.addf %102, %103 : vector<48x128xf32>
    %c0_38 = arith.constant 0 : index
    %c0_39 = arith.constant 0 : index
    %105 = vector.load %arg1[%c0_38, %c0_39] : memref<8x48xbf16, #tpu.memory_space<vmem>>, vector<8x48xbf16>
    %106 = arith.truncf %104 : vector<48x128xf32> to vector<48x128xbf16>
    %cst_40 = arith.constant dense<0.000000e+00> : vector<8x128xf32>
    %107 = tpu.matmul %105, %106, %cst_40 {dimension_numbers = #tpu.dot_dimension_numbers<[1], [0], [0], [1], [0, 0, 1, 1], [], []>} : vector<8x48xbf16>, vector<48x128xbf16>, vector<8x128xf32> -> vector<8x128xf32>
    %cst_41 = arith.constant 1.250000e-01 : f32
    %108 = vector.broadcast %cst_41 : f32 to vector<8x128xf32>
    %109 = arith.mulf %107, %108 : vector<8x128xf32>
    %c384 = arith.constant 384 : index
    %c0_42 = arith.constant 0 : index
    %110 = vector.load %arg2[%c384, %c0_42] : memref<1280x128xbf16, #tpu.memory_space<vmem>>, vector<128x128xbf16>
    %c9 = arith.constant 9 : index
    %c0_43 = arith.constant 0 : index
    %111 = vector.load %arg3[%c9, %c0_43] : memref<30x128xf32, #tpu.memory_space<vmem>>, vector<1x128xf32>
    %112 = arith.truncf %109 : vector<8x128xf32> to vector<8x128xbf16>
    %cst_44 = arith.constant dense<0.000000e+00> : vector<8x128xf32>
    %113 = tpu.matmul %112, %110, %cst_44 {dimension_numbers = #tpu.dot_dimension_numbers<[1], [0], [0], [1], [0, 0, 1, 1], [], []>} : vector<8x128xbf16>, vector<128x128xbf16>, vector<8x128xf32> -> vector<8x128xf32>
    %114 = vector.broadcast %111 : vector<1x128xf32> to vector<8x128xf32>
    %115 = arith.addf %113, %114 : vector<8x128xf32>
    %c10 = arith.constant 10 : index
    %c0_45 = arith.constant 0 : index
    %116 = vector.load %arg3[%c10, %c0_45] : memref<30x128xf32, #tpu.memory_space<vmem>>, vector<1x128xf32>
    %c11 = arith.constant 11 : index
    %c0_46 = arith.constant 0 : index
    %117 = vector.load %arg3[%c11, %c0_46] : memref<30x128xf32, #tpu.memory_space<vmem>>, vector<1x128xf32>
    %cst_47 = arith.constant 0.000000e+00 : f32
    %118 = vector.broadcast %cst_47 : f32 to vector<8x128xf32>
    %119 = arith.maximumf %115, %118 : vector<8x128xf32>
    %120 = vector.broadcast %4 : vector<8x1xf32> to vector<8x128xf32>
    %121 = arith.mulf %119, %120 : vector<8x128xf32>
    %cst_48 = arith.constant dense<0.000000e+00> : vector<128xf32>
    %122 = vector.multi_reduction <add>, %121, %cst_48 [0] : vector<8x128xf32> to vector<128xf32>
    %123 = vector.shape_cast %122 : vector<128xf32> to vector<1x128xf32>
    %cst_49 = arith.constant 0.166666672 : f32
    %124 = vector.broadcast %cst_49 : f32 to vector<1x128xf32>
    %125 = arith.mulf %123, %124 : vector<1x128xf32>
    %126 = arith.mulf %121, %121 : vector<8x128xf32>
    %cst_50 = arith.constant dense<0.000000e+00> : vector<128xf32>
    %127 = vector.multi_reduction <add>, %126, %cst_50 [0] : vector<8x128xf32> to vector<128xf32>
    %128 = vector.shape_cast %127 : vector<128xf32> to vector<1x128xf32>
    %cst_51 = arith.constant 0.166666672 : f32
    %129 = vector.broadcast %cst_51 : f32 to vector<1x128xf32>
    %130 = arith.mulf %128, %129 : vector<1x128xf32>
    %131 = arith.mulf %125, %125 : vector<1x128xf32>
    %132 = arith.subf %130, %131 : vector<1x128xf32>
    %cst_52 = arith.constant 0.000000e+00 : f32
    %133 = vector.broadcast %cst_52 : f32 to vector<1x128xf32>
    %134 = arith.maximumf %132, %133 : vector<1x128xf32>
    %cst_53 = arith.constant 9.99999974E-6 : f32
    %135 = vector.broadcast %cst_53 : f32 to vector<1x128xf32>
    %136 = arith.addf %134, %135 : vector<1x128xf32>
    %137 = math.rsqrt %136 : vector<1x128xf32>
    %138 = arith.mulf %116, %137 : vector<1x128xf32>
    %139 = arith.mulf %125, %138 : vector<1x128xf32>
    %140 = arith.subf %117, %139 : vector<1x128xf32>
    %141 = vector.broadcast %138 : vector<1x128xf32> to vector<8x128xf32>
    %142 = arith.mulf %119, %141 : vector<8x128xf32>
    %143 = vector.broadcast %140 : vector<1x128xf32> to vector<8x128xf32>
    %144 = arith.addf %142, %143 : vector<8x128xf32>
    %c512 = arith.constant 512 : index
    %c0_54 = arith.constant 0 : index
    %145 = vector.load %arg2[%c512, %c0_54] : memref<1280x128xbf16, #tpu.memory_space<vmem>>, vector<128x128xbf16>
    %c12 = arith.constant 12 : index
    %c0_55 = arith.constant 0 : index
    %146 = vector.load %arg3[%c12, %c0_55] : memref<30x128xf32, #tpu.memory_space<vmem>>, vector<1x128xf32>
    %147 = arith.truncf %144 : vector<8x128xf32> to vector<8x128xbf16>
    %cst_56 = arith.constant dense<0.000000e+00> : vector<8x128xf32>
    %148 = tpu.matmul %147, %145, %cst_56 {dimension_numbers = #tpu.dot_dimension_numbers<[1], [0], [0], [1], [0, 0, 1, 1], [], []>} : vector<8x128xbf16>, vector<128x128xbf16>, vector<8x128xf32> -> vector<8x128xf32>
    %149 = vector.broadcast %146 : vector<1x128xf32> to vector<8x128xf32>
    %150 = arith.addf %148, %149 : vector<8x128xf32>
    %c13 = arith.constant 13 : index
    %c0_57 = arith.constant 0 : index
    %151 = vector.load %arg3[%c13, %c0_57] : memref<30x128xf32, #tpu.memory_space<vmem>>, vector<1x128xf32>
    %c14 = arith.constant 14 : index
    %c0_58 = arith.constant 0 : index
    %152 = vector.load %arg3[%c14, %c0_58] : memref<30x128xf32, #tpu.memory_space<vmem>>, vector<1x128xf32>
    %cst_59 = arith.constant 0.000000e+00 : f32
    %153 = vector.broadcast %cst_59 : f32 to vector<8x128xf32>
    %154 = arith.maximumf %150, %153 : vector<8x128xf32>
    %155 = vector.broadcast %4 : vector<8x1xf32> to vector<8x128xf32>
    %156 = arith.mulf %154, %155 : vector<8x128xf32>
    %cst_60 = arith.constant dense<0.000000e+00> : vector<128xf32>
    %157 = vector.multi_reduction <add>, %156, %cst_60 [0] : vector<8x128xf32> to vector<128xf32>
    %158 = vector.shape_cast %157 : vector<128xf32> to vector<1x128xf32>
    %cst_61 = arith.constant 0.166666672 : f32
    %159 = vector.broadcast %cst_61 : f32 to vector<1x128xf32>
    %160 = arith.mulf %158, %159 : vector<1x128xf32>
    %161 = arith.mulf %156, %156 : vector<8x128xf32>
    %cst_62 = arith.constant dense<0.000000e+00> : vector<128xf32>
    %162 = vector.multi_reduction <add>, %161, %cst_62 [0] : vector<8x128xf32> to vector<128xf32>
    %163 = vector.shape_cast %162 : vector<128xf32> to vector<1x128xf32>
    %cst_63 = arith.constant 0.166666672 : f32
    %164 = vector.broadcast %cst_63 : f32 to vector<1x128xf32>
    %165 = arith.mulf %163, %164 : vector<1x128xf32>
    %166 = arith.mulf %160, %160 : vector<1x128xf32>
    %167 = arith.subf %165, %166 : vector<1x128xf32>
    %cst_64 = arith.constant 0.000000e+00 : f32
    %168 = vector.broadcast %cst_64 : f32 to vector<1x128xf32>
    %169 = arith.maximumf %167, %168 : vector<1x128xf32>
    %cst_65 = arith.constant 9.99999974E-6 : f32
    %170 = vector.broadcast %cst_65 : f32 to vector<1x128xf32>
    %171 = arith.addf %169, %170 : vector<1x128xf32>
    %172 = math.rsqrt %171 : vector<1x128xf32>
    %173 = arith.mulf %151, %172 : vector<1x128xf32>
    %174 = arith.mulf %160, %173 : vector<1x128xf32>
    %175 = arith.subf %152, %174 : vector<1x128xf32>
    %176 = vector.broadcast %173 : vector<1x128xf32> to vector<8x128xf32>
    %177 = arith.mulf %154, %176 : vector<8x128xf32>
    %178 = vector.broadcast %175 : vector<1x128xf32> to vector<8x128xf32>
    %179 = arith.addf %177, %178 : vector<8x128xf32>
    %c640 = arith.constant 640 : index
    %c0_66 = arith.constant 0 : index
    %180 = vector.load %arg2[%c640, %c0_66] : memref<1280x128xbf16, #tpu.memory_space<vmem>>, vector<128x128xbf16>
    %c15 = arith.constant 15 : index
    %c0_67 = arith.constant 0 : index
    %181 = vector.load %arg3[%c15, %c0_67] : memref<30x128xf32, #tpu.memory_space<vmem>>, vector<1x128xf32>
    %182 = arith.truncf %179 : vector<8x128xf32> to vector<8x128xbf16>
    %cst_68 = arith.constant dense<0.000000e+00> : vector<8x128xf32>
    %183 = tpu.matmul %182, %180, %cst_68 {dimension_numbers = #tpu.dot_dimension_numbers<[1], [0], [0], [1], [0, 0, 1, 1], [], []>} : vector<8x128xbf16>, vector<128x128xbf16>, vector<8x128xf32> -> vector<8x128xf32>
    %184 = vector.broadcast %181 : vector<1x128xf32> to vector<8x128xf32>
    %185 = arith.addf %183, %184 : vector<8x128xf32>
    %c768 = arith.constant 768 : index
    %c0_69 = arith.constant 0 : index
    %186 = vector.load %arg2[%c768, %c0_69] : memref<1280x128xbf16, #tpu.memory_space<vmem>>, vector<128x128xbf16>
    %c18 = arith.constant 18 : index
    %c0_70 = arith.constant 0 : index
    %187 = vector.load %arg3[%c18, %c0_70] : memref<30x128xf32, #tpu.memory_space<vmem>>, vector<1x128xf32>
    %188 = arith.truncf %185 : vector<8x128xf32> to vector<8x128xbf16>
    %cst_71 = arith.constant dense<0.000000e+00> : vector<8x128xf32>
    %189 = tpu.matmul %188, %186, %cst_71 {dimension_numbers = #tpu.dot_dimension_numbers<[1], [0], [0], [1], [0, 0, 1, 1], [], []>} : vector<8x128xbf16>, vector<128x128xbf16>, vector<8x128xf32> -> vector<8x128xf32>
    %190 = vector.broadcast %187 : vector<1x128xf32> to vector<8x128xf32>
    %191 = arith.addf %189, %190 : vector<8x128xf32>
    %c19 = arith.constant 19 : index
    %c0_72 = arith.constant 0 : index
    %192 = vector.load %arg3[%c19, %c0_72] : memref<30x128xf32, #tpu.memory_space<vmem>>, vector<1x128xf32>
    %c20 = arith.constant 20 : index
    %c0_73 = arith.constant 0 : index
    %193 = vector.load %arg3[%c20, %c0_73] : memref<30x128xf32, #tpu.memory_space<vmem>>, vector<1x128xf32>
    %cst_74 = arith.constant 0.000000e+00 : f32
    %194 = vector.broadcast %cst_74 : f32 to vector<8x128xf32>
    %195 = arith.maximumf %191, %194 : vector<8x128xf32>
    %196 = vector.broadcast %4 : vector<8x1xf32> to vector<8x128xf32>
    %197 = arith.mulf %195, %196 : vector<8x128xf32>
    %cst_75 = arith.constant dense<0.000000e+00> : vector<128xf32>
    %198 = vector.multi_reduction <add>, %197, %cst_75 [0] : vector<8x128xf32> to vector<128xf32>
    %199 = vector.shape_cast %198 : vector<128xf32> to vector<1x128xf32>
    %cst_76 = arith.constant 0.166666672 : f32
    %200 = vector.broadcast %cst_76 : f32 to vector<1x128xf32>
    %201 = arith.mulf %199, %200 : vector<1x128xf32>
    %202 = arith.mulf %197, %197 : vector<8x128xf32>
    %cst_77 = arith.constant dense<0.000000e+00> : vector<128xf32>
    %203 = vector.multi_reduction <add>, %202, %cst_77 [0] : vector<8x128xf32> to vector<128xf32>
    %204 = vector.shape_cast %203 : vector<128xf32> to vector<1x128xf32>
    %cst_78 = arith.constant 0.166666672 : f32
    %205 = vector.broadcast %cst_78 : f32 to vector<1x128xf32>
    %206 = arith.mulf %204, %205 : vector<1x128xf32>
    %207 = arith.mulf %201, %201 : vector<1x128xf32>
    %208 = arith.subf %206, %207 : vector<1x128xf32>
    %cst_79 = arith.constant 0.000000e+00 : f32
    %209 = vector.broadcast %cst_79 : f32 to vector<1x128xf32>
    %210 = arith.maximumf %208, %209 : vector<1x128xf32>
    %cst_80 = arith.constant 9.99999974E-6 : f32
    %211 = vector.broadcast %cst_80 : f32 to vector<1x128xf32>
    %212 = arith.addf %210, %211 : vector<1x128xf32>
    %213 = math.rsqrt %212 : vector<1x128xf32>
    %214 = arith.mulf %192, %213 : vector<1x128xf32>
    %215 = arith.mulf %201, %214 : vector<1x128xf32>
    %216 = arith.subf %193, %215 : vector<1x128xf32>
    %217 = vector.broadcast %214 : vector<1x128xf32> to vector<8x128xf32>
    %218 = arith.mulf %195, %217 : vector<8x128xf32>
    %219 = vector.broadcast %216 : vector<1x128xf32> to vector<8x128xf32>
    %220 = arith.addf %218, %219 : vector<8x128xf32>
    %c896 = arith.constant 896 : index
    %c0_81 = arith.constant 0 : index
    %221 = vector.load %arg2[%c896, %c0_81] : memref<1280x128xbf16, #tpu.memory_space<vmem>>, vector<128x128xbf16>
    %c21 = arith.constant 21 : index
    %c0_82 = arith.constant 0 : index
    %222 = vector.load %arg3[%c21, %c0_82] : memref<30x128xf32, #tpu.memory_space<vmem>>, vector<1x128xf32>
    %223 = arith.truncf %220 : vector<8x128xf32> to vector<8x128xbf16>
    %cst_83 = arith.constant dense<0.000000e+00> : vector<8x128xf32>
    %224 = tpu.matmul %223, %221, %cst_83 {dimension_numbers = #tpu.dot_dimension_numbers<[1], [0], [0], [1], [0, 0, 1, 1], [], []>} : vector<8x128xbf16>, vector<128x128xbf16>, vector<8x128xf32> -> vector<8x128xf32>
    %225 = vector.broadcast %222 : vector<1x128xf32> to vector<8x128xf32>
    %226 = arith.addf %224, %225 : vector<8x128xf32>
    %c22 = arith.constant 22 : index
    %c0_84 = arith.constant 0 : index
    %227 = vector.load %arg3[%c22, %c0_84] : memref<30x128xf32, #tpu.memory_space<vmem>>, vector<1x128xf32>
    %c23 = arith.constant 23 : index
    %c0_85 = arith.constant 0 : index
    %228 = vector.load %arg3[%c23, %c0_85] : memref<30x128xf32, #tpu.memory_space<vmem>>, vector<1x128xf32>
    %cst_86 = arith.constant 0.000000e+00 : f32
    %229 = vector.broadcast %cst_86 : f32 to vector<8x128xf32>
    %230 = arith.maximumf %226, %229 : vector<8x128xf32>
    %231 = vector.broadcast %4 : vector<8x1xf32> to vector<8x128xf32>
    %232 = arith.mulf %230, %231 : vector<8x128xf32>
    %cst_87 = arith.constant dense<0.000000e+00> : vector<128xf32>
    %233 = vector.multi_reduction <add>, %232, %cst_87 [0] : vector<8x128xf32> to vector<128xf32>
    %234 = vector.shape_cast %233 : vector<128xf32> to vector<1x128xf32>
    %cst_88 = arith.constant 0.166666672 : f32
    %235 = vector.broadcast %cst_88 : f32 to vector<1x128xf32>
    %236 = arith.mulf %234, %235 : vector<1x128xf32>
    %237 = arith.mulf %232, %232 : vector<8x128xf32>
    %cst_89 = arith.constant dense<0.000000e+00> : vector<128xf32>
    %238 = vector.multi_reduction <add>, %237, %cst_89 [0] : vector<8x128xf32> to vector<128xf32>
    %239 = vector.shape_cast %238 : vector<128xf32> to vector<1x128xf32>
    %cst_90 = arith.constant 0.166666672 : f32
    %240 = vector.broadcast %cst_90 : f32 to vector<1x128xf32>
    %241 = arith.mulf %239, %240 : vector<1x128xf32>
    %242 = arith.mulf %236, %236 : vector<1x128xf32>
    %243 = arith.subf %241, %242 : vector<1x128xf32>
    %cst_91 = arith.constant 0.000000e+00 : f32
    %244 = vector.broadcast %cst_91 : f32 to vector<1x128xf32>
    %245 = arith.maximumf %243, %244 : vector<1x128xf32>
    %cst_92 = arith.constant 9.99999974E-6 : f32
    %246 = vector.broadcast %cst_92 : f32 to vector<1x128xf32>
    %247 = arith.addf %245, %246 : vector<1x128xf32>
    %248 = math.rsqrt %247 : vector<1x128xf32>
    %249 = arith.mulf %227, %248 : vector<1x128xf32>
    %250 = arith.mulf %236, %249 : vector<1x128xf32>
    %251 = arith.subf %228, %250 : vector<1x128xf32>
    %252 = vector.broadcast %249 : vector<1x128xf32> to vector<8x128xf32>
    %253 = arith.mulf %230, %252 : vector<8x128xf32>
    %254 = vector.broadcast %251 : vector<1x128xf32> to vector<8x128xf32>
    %255 = arith.addf %253, %254 : vector<8x128xf32>
    %c1024 = arith.constant 1024 : index
    %c0_93 = arith.constant 0 : index
    %256 = vector.load %arg2[%c1024, %c0_93] : memref<1280x128xbf16, #tpu.memory_space<vmem>>, vector<128x128xbf16>
    %c24 = arith.constant 24 : index
    %c0_94 = arith.constant 0 : index
    %257 = vector.load %arg3[%c24, %c0_94] : memref<30x128xf32, #tpu.memory_space<vmem>>, vector<1x128xf32>
    %258 = arith.truncf %255 : vector<8x128xf32> to vector<8x128xbf16>
    %cst_95 = arith.constant dense<0.000000e+00> : vector<8x128xf32>
    %259 = tpu.matmul %258, %256, %cst_95 {dimension_numbers = #tpu.dot_dimension_numbers<[1], [0], [0], [1], [0, 0, 1, 1], [], []>} : vector<8x128xbf16>, vector<128x128xbf16>, vector<8x128xf32> -> vector<8x128xf32>
    %260 = vector.broadcast %257 : vector<1x128xf32> to vector<8x128xf32>
    %261 = arith.addf %259, %260 : vector<8x128xf32>
    %c25 = arith.constant 25 : index
    %c0_96 = arith.constant 0 : index
    %262 = vector.load %arg3[%c25, %c0_96] : memref<30x128xf32, #tpu.memory_space<vmem>>, vector<1x128xf32>
    %c26 = arith.constant 26 : index
    %c0_97 = arith.constant 0 : index
    %263 = vector.load %arg3[%c26, %c0_97] : memref<30x128xf32, #tpu.memory_space<vmem>>, vector<1x128xf32>
    %cst_98 = arith.constant 0.000000e+00 : f32
    %264 = vector.broadcast %cst_98 : f32 to vector<8x128xf32>
    %265 = arith.maximumf %261, %264 : vector<8x128xf32>
    %266 = vector.broadcast %4 : vector<8x1xf32> to vector<8x128xf32>
    %267 = arith.mulf %265, %266 : vector<8x128xf32>
    %cst_99 = arith.constant dense<0.000000e+00> : vector<128xf32>
    %268 = vector.multi_reduction <add>, %267, %cst_99 [0] : vector<8x128xf32> to vector<128xf32>
    %269 = vector.shape_cast %268 : vector<128xf32> to vector<1x128xf32>
    %cst_100 = arith.constant 0.166666672 : f32
    %270 = vector.broadcast %cst_100 : f32 to vector<1x128xf32>
    %271 = arith.mulf %269, %270 : vector<1x128xf32>
    %272 = arith.mulf %267, %267 : vector<8x128xf32>
    %cst_101 = arith.constant dense<0.000000e+00> : vector<128xf32>
    %273 = vector.multi_reduction <add>, %272, %cst_101 [0] : vector<8x128xf32> to vector<128xf32>
    %274 = vector.shape_cast %273 : vector<128xf32> to vector<1x128xf32>
    %cst_102 = arith.constant 0.166666672 : f32
    %275 = vector.broadcast %cst_102 : f32 to vector<1x128xf32>
    %276 = arith.mulf %274, %275 : vector<1x128xf32>
    %277 = arith.mulf %271, %271 : vector<1x128xf32>
    %278 = arith.subf %276, %277 : vector<1x128xf32>
    %cst_103 = arith.constant 0.000000e+00 : f32
    %279 = vector.broadcast %cst_103 : f32 to vector<1x128xf32>
    %280 = arith.maximumf %278, %279 : vector<1x128xf32>
    %cst_104 = arith.constant 9.99999974E-6 : f32
    %281 = vector.broadcast %cst_104 : f32 to vector<1x128xf32>
    %282 = arith.addf %280, %281 : vector<1x128xf32>
    %283 = math.rsqrt %282 : vector<1x128xf32>
    %284 = arith.mulf %262, %283 : vector<1x128xf32>
    %285 = arith.mulf %271, %284 : vector<1x128xf32>
    %286 = arith.subf %263, %285 : vector<1x128xf32>
    %287 = vector.broadcast %284 : vector<1x128xf32> to vector<8x128xf32>
    %288 = arith.mulf %265, %287 : vector<8x128xf32>
    %289 = vector.broadcast %286 : vector<1x128xf32> to vector<8x128xf32>
    %290 = arith.addf %288, %289 : vector<8x128xf32>
    %c1152 = arith.constant 1152 : index
    %c0_105 = arith.constant 0 : index
    %291 = vector.load %arg2[%c1152, %c0_105] : memref<1280x128xbf16, #tpu.memory_space<vmem>>, vector<128x128xbf16>
    %c27 = arith.constant 27 : index
    %c0_106 = arith.constant 0 : index
    %292 = vector.load %arg3[%c27, %c0_106] : memref<30x128xf32, #tpu.memory_space<vmem>>, vector<1x128xf32>
    %293 = arith.truncf %290 : vector<8x128xf32> to vector<8x128xbf16>
    %cst_107 = arith.constant dense<0.000000e+00> : vector<8x128xf32>
    %294 = tpu.matmul %293, %291, %cst_107 {dimension_numbers = #tpu.dot_dimension_numbers<[1], [0], [0], [1], [0, 0, 1, 1], [], []>} : vector<8x128xbf16>, vector<128x128xbf16>, vector<8x128xf32> -> vector<8x128xf32>
    %295 = vector.broadcast %292 : vector<1x128xf32> to vector<8x128xf32>
    %296 = arith.addf %294, %295 : vector<8x128xf32>
    %c0_108 = arith.constant 0 : index
    %c0_109 = arith.constant 0 : index
    %297 = vector.load %arg4[%c0_108, %c0_109] : memref<16x128xf32, #tpu.memory_space<vmem>>, vector<8x128xf32>
    tpu.vector_store %arg4[%c0_108, %c0_109], %185 {strides = array<i32>} : memref<16x128xf32, #tpu.memory_space<vmem>>, vector<8x128xf32>,
    %c8_110 = arith.constant 8 : index
    %c0_111 = arith.constant 0 : index
    %298 = vector.load %arg4[%c8_110, %c0_111] : memref<16x128xf32, #tpu.memory_space<vmem>>, vector<8x128xf32>
    tpu.vector_store %arg4[%c8_110, %c0_111], %296 {strides = array<i32>} : memref<16x128xf32, #tpu.memory_space<vmem>>, vector<8x128xf32>,
    return
  }
}

</mosaic_0001>

<bundles_post_ra>
// kernel: tpu_custom_call.1
= control target key start
LH: loop header
LB: loop body
LE: loop exit
PB: predicated region body
PF: predicated region fallthrough
CT: control target
= control target key end

     0   :  { %9 = vsyncpa [#allocation3], 0  ;;  %s2627_s0 = inlined_call_operand.hbm [shape: f32[48,128], index: 0, kind: input, shape index: {}]   ;;  %s2628_s1 = inlined_call_operand.hbm [shape: bf16[8,48], index: 1, kind: input, shape index: {}]   ;;  %s2629_s2 = inlined_call_operand.hbm [shape: bf16[1280,128], index: 2, kind: input, shape index: {}]   ;;  %s2630_s3 = inlined_call_operand.hbm [shape: f32[30,128], index: 3, kind: input, shape index: {}]   ;;  %s2631_s4 = inlined_call_operand.hbm [shape: f32[16,128], index: 4, kind: output, shape index: {}]  }
   0x1   :  { %10 = vsyncpa [#allocation6], 0 }
   0x2   :  { %11 = vsyncpa [#allocation9], 0 }
   0x3   :  { %12 = vsyncpa [#allocation4], 0  ;;  %s2344_s15 = smov [#allocation5]   ;;  %s2345_s17 = smov [#allocation2]  }
   0x4   :  { %s31_s16 = sshll.u32 %s2344_s15, 4  ;;  %s18_s18 = sshll.u32 %s2345_s17, 4  ;;  %s32_s16 = int_to_ptr.vmem [resolvable:$true] %s31_s16  ;;  %s2380_s18 = int_to_ptr.vmem [resolvable:$true] %s18_s18 }
   0x5   :  { %s2226_s21 = scalar_lea.hbm %s2628_s1, 64 }
   0x6   :  { %p2227_p0 = scmp.ne.s32.totalorder %s2628_s1, %s2226_s21  ;;  %p2230_p1 = scmp.lt.u32.totalorder %s2226_s21, %s2628_s1 }
   0x8   :  { %p2232_p2 = pnand %p2230_p1, %p2227_p0 }
   0xa   :  { %2235 = shalt.err (!%p2232_p2)
}
   0xb   :  { %s2236_s26 = scalar_lea.vmem %s32_s16, 64  ;;  %p2241_p4 = scmp.lt.s32.totalorder %s32_s16, %s32_s16 }
   0xc   :  { %p2237_p3 = scmp.ne.s32.totalorder %s32_s16, %s2236_s26  ;;  %p2242_p5 = scmp.lt.s32.totalorder %s2236_s26, %s2236_s26 }
   0xe   :  { %p2243_p6 = por %p2242_p5, %p2241_p4 }
  0x10   :  { %p2244_p7 = pnand %p2243_p6, %p2237_p3 }
  0x12   :  { %2247 = shalt.err (!%p2244_p7)
}
  0x13   :  { %34 = dma.hbm_to_vmem [thread:$0]  %s2628_s1, 64, %s32_s16, [#allocation6]  }
  0x14   :  { %s2248_s5 = scalar_lea.hbm %s2627_s0, 768 }
  0x15   :  { %p2249_p8 = scmp.ne.s32.totalorder %s2627_s0, %s2248_s5  ;;  %p2252_p9 = scmp.lt.u32.totalorder %s2248_s5, %s2627_s0 }
  0x17   :  { %p2254_p10 = pnand %p2252_p9, %p2249_p8 }
  0x19   :  { %2257 = shalt.err (!%p2254_p10)
}
  0x1a   :  { %s2258_s10 = scalar_lea.vmem %s2380_s18, 768  ;;  %p2263_p12 = scmp.lt.s32.totalorder %s2380_s18, %s2380_s18 }
  0x1b   :  { %p2259_p11 = scmp.ne.s32.totalorder %s2380_s18, %s2258_s10  ;;  %p2264_p13 = scmp.lt.s32.totalorder %s2258_s10, %s2258_s10 }
  0x1d   :  { %p2265_p0 = por %p2264_p13, %p2263_p12 }
  0x1f   :  { %p2266_p1 = pnand %p2265_p0, %p2259_p11 }
  0x21   :  { %2269 = shalt.err (!%p2266_p1)
}
  0x22   :  { %s2346_s1 = smov 128   ;;  %s2347_s11 = smov 8  }
  0x23   :  { %24 = dma.hbm_to_vmem [thread:$0]  %s2627_s0, 768, %s2380_s18, [#allocation3], %s2346_s1, %s2346_s1, %s2347_s11  }
  0x24   :  { %s2348_s14 = smov [#allocation7]   ;;  %s2270_s19 = scalar_lea.hbm %s2629_s2, 10240 }
  0x25   :  { %s40_s15 = sshll.u32 %s2348_s14, 4  ;;  %p2271_p2 = scmp.ne.s32.totalorder %s2629_s2, %s2270_s19  ;;  %s41_s15 = int_to_ptr.vmem [resolvable:$true] %s40_s15 }
  0x26   :  { %p2274_p3 = scmp.lt.u32.totalorder %s2270_s19, %s2629_s2 }
  0x28   :  { %p2276_p4 = pnand %p2274_p3, %p2271_p2 }
  0x2a   :  { %2279 = shalt.err (!%p2276_p4)
}
  0x2b   :  { %s2280_s24 = scalar_lea.vmem %s41_s15, 10240  ;;  %p2285_p6 = scmp.lt.s32.totalorder %s41_s15, %s41_s15 }
  0x2c   :  { %p2281_p5 = scmp.ne.s32.totalorder %s41_s15, %s2280_s24  ;;  %p2286_p7 = scmp.lt.s32.totalorder %s2280_s24, %s2280_s24 }
  0x2e   :  { %p2287_p8 = por %p2286_p7, %p2285_p6 }
  0x30   :  { %p2288_p9 = pnand %p2287_p8, %p2281_p5 }
  0x32   :  { %2291 = shalt.err (!%p2288_p9)
}
  0x33   :  { %s2349_s0 = smov 64   ;;  %s2350_s18 = smov 4  }
  0x34   :  { %46 = dma.hbm_to_vmem [thread:$0]  %s2629_s2, 10240, %s41_s15, [#allocation6], %s2349_s0, %s2349_s0, %s2350_s18  }
  0x35   :  { %s2351_s27 = smov [#allocation8]   ;;  %s2292_s5 = scalar_lea.hbm %s2630_s3, 512 }
  0x36   :  { %s52_s28 = sshll.u32 %s2351_s27, 4  ;;  %p2293_p10 = scmp.ne.s32.totalorder %s2630_s3, %s2292_s5  ;;  %s53_s28 = int_to_ptr.vmem [resolvable:$true] %s52_s28 }
  0x37   :  { %p2296_p11 = scmp.lt.u32.totalorder %s2292_s5, %s2630_s3 }
  0x39   :  { %p2298_p12 = pnand %p2296_p11, %p2293_p10 }
  0x3b   :  { %2301 = shalt.err (!%p2298_p12)
}
  0x3c   :  { %s2302_s10 = scalar_lea.vmem %s53_s28, 512  ;;  %p2307_p0 = scmp.lt.s32.totalorder %s53_s28, %s53_s28 }
  0x3d   :  { %p2303_p13 = scmp.ne.s32.totalorder %s53_s28, %s2302_s10  ;;  %p2308_p1 = scmp.lt.s32.totalorder %s2302_s10, %s2302_s10 }
  0x3f   :  { %p2309_p2 = por %p2308_p1, %p2307_p0 }
  0x41   :  { %p2310_p3 = pnand %p2309_p2, %p2303_p13 }
  0x43   :  { %2313 = shalt.err (!%p2310_p3)
}
  0x44   :  { %58 = dma.hbm_to_vmem [thread:$0]  %s2630_s3, 512, %s53_s28, [#allocation9], %s2346_s1, %s2346_s1, %s2347_s11  }
  0x45   :  { %2336 = dma.done.wait [#allocation3], 768  }
  0x46   :  { %2337 = vsyncadd [#allocation3], 4294966528 }
  0x47   :  { %2338 = dma.done.wait [#allocation6], 10304  }
  0x48   :  { %2339 = vsyncadd [#allocation6], 4294956992 }
  0x49   :  { %2340 = dma.done.wait [#allocation9], 512  }
  0x4a   :  { %2341 = vsyncadd [#allocation9], 4294966784  ;;  %v2352_v0 = vmov 0.0   ;;  %vm2353_vm0 = vmmov 0   ;;  %v2130_v1 = vld [vmem:[#allocation7] sm:$0xff]   ;;  %v2131_v2 = vld [vmem:[#allocation7 + $0x8] sm:$0xff]  }
  0x4b   :  { %1885 = vmatprep.subr.bf16.mxu0 %v2352_v0  ;;  %1901 = vmatprep.mubr.msk.bf16.mxu0 %vm2353_vm0, %v2352_v0  ;;  %v2132_v3 = vld [vmem:[#allocation7 + $0x10] sm:$0xff]   ;;  %v2133_v4 = vld [vmem:[#allocation7 + $0x18] sm:$0xff]   ;;  %v2134_v5 = vld [vmem:[#allocation7 + $0x20] sm:$0xff]   ;;  %vm672_vm1 = vcmask 392192   ;;  %s2354_s3 = smov [#allocation10]  }
  0x4c   :  { %1913 = vmatprep.subr.bf16.mxu1 %v2352_v0  ;;  %1929 = vmatprep.mubr.msk.bf16.mxu1 %vm2353_vm0, %v2352_v0  ;;  %v2135_v6 = vld [vmem:[#allocation7 + $0x28] sm:$0xff]   ;;  %v2136_v7 = vld [vmem:[#allocation7 + $0x30] sm:$0xff]   ;;  %v2137_v8 = vld [vmem:[#allocation7 + $0x38] sm:$0xff]   ;;  %s1679_s13 = sshll.u32 %s2354_s3, 4  ;;  %s1680_s13 = int_to_ptr.vmem [resolvable:$true] %s1679_s13 }
  0x4d   :  { %1886 = vmatpush3.bf16.msra.mxu0 %v2130_v1  ;;  %v77_v9 = vld [vmem:[#allocation2] sm:$0xff]  ;;  %v78_v10 = vld [vmem:[#allocation2 + $0x8] sm:$0xff]  ;;  %v79_v12 = vld [vmem:[#allocation2 + $0x10] sm:$0xff]  ;;  %s2314_s14 = scalar_lea.vmem %s1680_s13, 256  ;;  %p2319_p5 = scmp.lt.s32.totalorder %s1680_s13, %s1680_s13 }
  0x4e   :  { %1887 = vmatprep.subr.bf16.mxu0 %v2352_v0  ;;  %v100_v11 = vpack.c.bf16 %v78_v10, %v77_v9  ;;  %v80_v13 = vld [vmem:[#allocation2 + $0x18] sm:$0xff]  ;;  %v81_v15 = vld [vmem:[#allocation2 + $0x20] sm:$0xff]  ;;  %v82_v16 = vld [vmem:[#allocation2 + $0x28] sm:$0xff]  ;;  %p2315_p4 = scmp.ne.s32.totalorder %s1680_s13, %s2314_s14  ;;  %p2320_p6 = scmp.lt.s32.totalorder %s2314_s14, %s2314_s14 }
  0x4f   :  { %v101_v14 = vpack.c.bf16 %v80_v13, %v79_v12  ;;  %v102_v17 = vpack.c.bf16 %v82_v16, %v81_v15  ;;  %v2138_v18 = vld [vmem:[#allocation7 + $0x40] sm:$0xff]   ;;  %v2139_v19 = vld [vmem:[#allocation7 + $0x48] sm:$0xff]   ;;  %v2140_v20 = vld [vmem:[#allocation7 + $0x50] sm:$0xff]  }
  0x50   :  { %1914 = vmatpush3.bf16.msra.mxu1 %v2138_v18  ;;  %v2141_v21 = vld [vmem:[#allocation7 + $0x58] sm:$0xff]   ;;  %v2142_v22 = vld [vmem:[#allocation7 + $0x60] sm:$0xff]   ;;  %v2143_v23 = vld [vmem:[#allocation7 + $0x68] sm:$0xff]   ;;  %p2321_p7 = por %p2320_p6, %p2319_p5 }
  0x51   :  { %1888 = vmatpush3.bf16.msra.mxu0 %v2131_v2  ;;  %1915 = vmatprep.subr.bf16.mxu1 %v2352_v0  ;;  %v2144_v24 = vld [vmem:[#allocation7 + $0x70] sm:$0xff]   ;;  %v2145_v25 = vld [vmem:[#allocation7 + $0x78] sm:$0xff]   ;;  %v1694_v26 = vld [vmem:[#allocation8] ss:$0 sm:$0xff] }
  0x52   :  { %1889 = vmatprep.subr.bf16.mxu0 %v2352_v0  ;;  %p2322_p8 = pnand %p2321_p7, %p2315_p4 }
  0x54   :  { %1916 = vmatpush3.bf16.msra.mxu1 %v2139_v19 }
  0x55   :  { %1890 = vmatpush3.bf16.msra.mxu0 %v2132_v3  ;;  %1917 = vmatprep.subr.bf16.mxu1 %v2352_v0 }
  0x56   :  { %1891 = vmatprep.subr.bf16.mxu0 %v2352_v0 }
  0x58   :  { %1918 = vmatpush3.bf16.msra.mxu1 %v2140_v20 }
  0x59   :  { %1892 = vmatpush3.bf16.msra.mxu0 %v2133_v4  ;;  %1919 = vmatprep.subr.bf16.mxu1 %v2352_v0 }
  0x5a   :  { %1893 = vmatprep.subr.bf16.mxu0 %v2352_v0 }
  0x5c   :  { %1920 = vmatpush3.bf16.msra.mxu1 %v2141_v21 }
  0x5d   :  { %1894 = vmatpush3.bf16.msra.mxu0 %v2134_v5  ;;  %1921 = vmatprep.subr.bf16.mxu1 %v2352_v0 }
  0x5e   :  { %1895 = vmatprep.subr.bf16.mxu0 %v2352_v0 }
  0x60   :  { %1922 = vmatpush3.bf16.msra.mxu1 %v2142_v22  ;;  %v72_v22 = vlaneseq }
  0x61   :  { %1896 = vmatpush3.bf16.msra.mxu0 %v2135_v6  ;;  %1923 = vmatprep.subr.bf16.mxu1 %v2352_v0 }
  0x62   :  { %1897 = vmatprep.subr.bf16.mxu0 %v2352_v0 }
  0x64   :  { %1924 = vmatpush3.bf16.msra.mxu1 %v2143_v23  ;;  %v2479_v23 = vshrl.u32 %v72_v22, 7 }
  0x65   :  { %1898 = vmatpush3.bf16.msra.mxu0 %v2136_v7  ;;  %1925 = vmatprep.subr.bf16.mxu1 %v2352_v0 }
  0x66   :  { %1899 = vmatprep.subr.bf16.mxu0 %v2352_v0  ;;  %vm74_vm2 = vcmp.lt.s32.totalorder %v2479_v23, 6 }
  0x68   :  { %1926 = vmatpush3.bf16.msra.mxu1 %v2144_v24  ;;  %v212_v24 = vld [vmem:[#allocation8 + $0x1] sm:$0x1] }
  0x69   :  { %1900 = vmatpush3.bf16.msra.mxu0 %v2137_v8  ;;  %1927 = vmatprep.subr.bf16.mxu1 %v2352_v0 }
  0x6a   :  { %1941 = vmatprep.subr.bf16.mxu0 %v2352_v0 }
  0x6c   :  { %1902 = vmatmul.mubr.bf16.vlgmr.msra.gmra.mrb[0].mxu0 %v100_v11  ;;  %1928 = vmatpush3.bf16.msra.mxu1 %v2145_v25  ;;  %v2482_v25 = vsub.s32 0, %v2479_v23 }
  0x6d   :  { %1905 = vmatprep.mubr.msk.bf16.mxu0 %vm2353_vm0, %v2352_v0  ;;  %1969 = vmatprep.subr.bf16.mxu1 %v2352_v0 }
  0x74   :  { %1906 = vmatmul.mubr.bf16.gmra.mrb[4].mxu0 %v101_v14 }
  0x75   :  { %1909 = vmatprep.mubr.msk.bf16.mxu0 %vm2353_vm0, %v2352_v0 }
  0x7c   :  { %1910 = vmatmul.mubr.bf16.gmra.mrb[8].mxu0 %v102_v17 }
  0x7d   :  { %1957 = vmatprep.mubr.msk.bf16.mxu0 %vm2353_vm0, %v2352_v0 }
 0x13f   :  { %v189_v27 = vpop.f32.mrb[0].mxu0 }
 0x140   :  { %v190_v28 = vadd.f32 %v1694_v26, %v189_v27  ;;  %v1903_v29 = vpop.f32.mrb[1].mxu0 }
 0x141   :  { %v192_v30 = vpop.f32.mrb[2].mxu0 }
 0x142   :  { %v2469_v31 = vmax.f32 %v190_v28, 0.0  ;;  %v193_v32 = vadd.f32 %v1694_v26, %v192_v30  ;;  %v1904_v33 = vpop.f32.mrb[3].mxu0  ;;  %v213_v28 = vld [vmem:[#allocation8 + $0x2] sm:$0x1] }
 0x144   :  { %v2471_v34 = vmax.f32 %v193_v32, 0.0  ;;  %v232_v35 = vmul.f32 %v2469_v31, %v2469_v31 }
 0x146   :  { %v220_v36 = vadd.f32 %v2471_v34, %v2469_v31  ;;  %v233_v37 = vmul.f32 %v2471_v34, %v2471_v34 }
 0x147   :  { %v197_v38 = vpop.f32.mrb[4].mxu0 }
 0x148   :  { %v238_v39 = vadd.f32 %v233_v37, %v232_v35  ;;  %v198_v40 = vadd.f32 %v1694_v26, %v197_v38  ;;  %v1907_v41 = vpop.f32.mrb[5].mxu0 }
 0x149   :  { %v200_v42 = vpop.f32.mrb[6].mxu0 }
 0x14a   :  { %v216_v43 = vmax.f32 %v198_v40, 0.0  ;;  %v201_v44 = vadd.f32 %v1694_v26, %v200_v42  ;;  %v1908_v45 = vpop.f32.mrb[7].mxu0 }
 0x14c   :  { %v221_v46 = vadd.f32 %v220_v36, %v216_v43  ;;  %v234_v47 = vmul.f32 %v216_v43, %v216_v43  ;;  %v217_v48 = vmax.f32 %v201_v44, 0.0 }
 0x14e   :  { %v239_v49 = vadd.f32 %v238_v39, %v234_v47  ;;  %v222_v50 = vadd.f32 %v221_v46, %v217_v48  ;;  %v235_v51 = vmul.f32 %v217_v48, %v217_v48 }
 0x14f   :  { %v205_v52 = vpop.f32.mrb[8].mxu0 }
 0x150   :  { %v240_v53 = vadd.f32 %v239_v49, %v235_v51  ;;  %v206_v54 = vadd.f32 %v1694_v26, %v205_v52  ;;  %v1911_v55 = vpop.f32.mrb[9].mxu0  ;;  %v2150_v52 = vld [vmem:[#allocation7 + $0xa0] sm:$0xff]  }
 0x151   :  { %v208_v56 = vpop.f32.mrb[10].mxu0  ;;  %v2153_v55 = vld [vmem:[#allocation7 + $0xb8] sm:$0xff]  }
 0x152   :  { %v218_v57 = vmax.f32 %v206_v54, 0.0  ;;  %v209_v58 = vadd.f32 %v1694_v26, %v208_v56  ;;  %v1912_v59 = vpop.f32.mrb[11].mxu0  ;;  %v2152_v54 = vld [vmem:[#allocation7 + $0xb0] sm:$0xff]   ;;  %v1703_v56 = vld [vmem:[#allocation8 + $0x3] ss:$0 sm:$0xff] }
 0x154   :  { %v223_v60 = vadd.f32 %v222_v50, %v218_v57  ;;  %v236_v61 = vmul.f32 %v218_v57, %v218_v57  ;;  %v219_v62 = vmax.f32 %v209_v58, 0.0 }
 0x156   :  { %v241_v63 = vadd.f32 %v240_v53, %v236_v61  ;;  %v224_v1 = vadd.f32 %v223_v60, %v219_v62  ;;  %v237_v2 = vmul.f32 %v219_v62, %v219_v62  ;;  %v2151_v53 = vld [vmem:[#allocation7 + $0xa8] sm:$0xff]  }
 0x158   :  { %v225_v3 = vrot.slane %v224_v1, 4  ;;  %v242_v4 = vadd.f32 %v241_v63, %v237_v2 }
 0x15a   :  { %v226_v5 = vadd.f32 %v225_v3, %v224_v1  ;;  %v243_v6 = vrot.slane %v242_v4, 4 }
 0x15c   :  { %v227_v7 = vrot.slane %v226_v5, 2  ;;  %v244_v8 = vadd.f32 %v243_v6, %v242_v4 }
 0x15e   :  { %v228_v9 = vadd.f32 %v227_v7, %v226_v5  ;;  %v245_v10 = vrot.slane %v244_v8, 2 }
 0x160   :  { %v229_v11 = vrot.slane %v228_v9, 1  ;;  %v246_v12 = vadd.f32 %v245_v10, %v244_v8 }
 0x162   :  { %v230_v13 = vadd.f32 %v229_v11, %v228_v9  ;;  %v247_v14 = vrot.slane %v246_v12, 1 }
 0x164   :  { %v231_v15 = vmul.f32 0.020833334, %v230_v13  ;;  %v248_v16 = vadd.f32 %v247_v14, %v246_v12 }
 0x166   :  { %v249_v17 = vmul.f32 0.020833334, %v248_v16  ;;  %v250_v18 = vmul.f32 %v231_v15, %v231_v15 }
 0x168   :  { %v251_v19 = vsub.f32 %v249_v17, %v250_v18 }
 0x16a   :  { %v252_v20 = vmax.f32 %v251_v19, 0.0 }
 0x16c   :  { %v253_v21 = vadd.f32 1e-05, %v252_v20 }
 0x16e   :  { %2210 = vrsqrt.f32 %v253_v21 }
 0x178   :  { %v2211_v26 = vpop.eup %2210 }
 0x179   :  { %v255_v27 = vmul.f32 %v2211_v26, %v212_v24 }
 0x17b   :  { %v256_v29 = vmul.f32 %v255_v27, %v231_v15  ;;  %v261_v30 = vrot.slane %v255_v27, %v2482_v25 }
 0x17d   :  { %v257_v32 = vsub.f32 %v213_v28, %v256_v29  ;;  %v267_v33 = vmul.f32 %v261_v30, %v219_v62  ;;  %v262_v35 = vmul.f32 %v261_v30, %v2469_v31  ;;  %v263_v36 = vmul.f32 %v261_v30, %v2471_v34  ;;  %v2146_v31 = vld [vmem:[#allocation7 + $0x80] sm:$0xff]   ;;  %v2147_v34 = vld [vmem:[#allocation7 + $0x88] sm:$0xff]  }
 0x17e   :  { %v264_v37 = vmul.f32 %v261_v30, %v216_v43  ;;  %v265_v38 = vmul.f32 %v261_v30, %v217_v48  ;;  %v266_v39 = vmul.f32 %v261_v30, %v218_v57  ;;  %1942 = vmatpush3.bf16.msra.mxu0 %v2146_v31  ;;  %v2148_v43 = vld [vmem:[#allocation7 + $0x90] sm:$0xff]   ;;  %v2149_v48 = vld [vmem:[#allocation7 + $0x98] sm:$0xff]  }
 0x17f   :  { %v271_v40 = vrot.slane %v257_v32, %v2482_v25  ;;  %1943 = vmatprep.subr.bf16.mxu0 %v2352_v0 }
 0x181   :  { %v272_v41 = vadd.f32 %v271_v40, %v262_v35  ;;  %v273_v42 = vadd.f32 %v271_v40, %v263_v36  ;;  %v274_v44 = vadd.f32 %v271_v40, %v264_v37  ;;  %v275_v45 = vadd.f32 %v271_v40, %v265_v38 }
 0x182   :  { %v276_v46 = vadd.f32 %v271_v40, %v266_v39  ;;  %v277_v47 = vadd.f32 %v271_v40, %v267_v33  ;;  %1944 = vmatpush3.bf16.msra.mxu0 %v2147_v34 }
 0x183   :  { %v295_v49 = vpack.c.bf16 %v273_v42, %v272_v41  ;;  %v296_v50 = vpack.c.bf16 %v275_v45, %v274_v44  ;;  %1945 = vmatprep.subr.bf16.mxu0 %v2352_v0 }
 0x184   :  { %v297_v51 = vpack.c.bf16 %v277_v47, %v276_v46 }
 0x185   :  { %1930 = vmatmul.mubr.bf16.vlgmr.msra.gmra.mrb[0].mxu1 %v295_v49 }
 0x186   :  { %1933 = vmatprep.mubr.msk.bf16.mxu1 %vm2353_vm0, %v2352_v0  ;;  %1946 = vmatpush3.bf16.msra.mxu0 %v2148_v43 }
 0x187   :  { %1947 = vmatprep.subr.bf16.mxu0 %v2352_v0 }
 0x18a   :  { %1948 = vmatpush3.bf16.msra.mxu0 %v2149_v48 }
 0x18b   :  { %1949 = vmatprep.subr.bf16.mxu0 %v2352_v0 }
 0x18d   :  { %1934 = vmatmul.mubr.bf16.gmra.mrb[4].mxu1 %v296_v50 }
 0x18e   :  { %1937 = vmatprep.mubr.msk.bf16.mxu1 %vm2353_vm0, %v2352_v0  ;;  %1950 = vmatpush3.bf16.msra.mxu0 %v2150_v52 }
 0x18f   :  { %1951 = vmatprep.subr.bf16.mxu0 %v2352_v0 }
 0x192   :  { %1952 = vmatpush3.bf16.msra.mxu0 %v2151_v53 }
 0x193   :  { %1953 = vmatprep.subr.bf16.mxu0 %v2352_v0 }
 0x195   :  { %1938 = vmatmul.mubr.bf16.gmra.mrb[8].mxu1 %v297_v51 }
 0x196   :  { %1975 = vmatprep.mubr.msk.bf16.mxu1 %vm2353_vm0, %v2352_v0  ;;  %1954 = vmatpush3.bf16.msra.mxu0 %v2152_v54  ;;  %v407_v54 = vld [vmem:[#allocation8 + $0x4] sm:$0x1] }
 0x197   :  { %1955 = vmatprep.subr.bf16.mxu0 %v2352_v0 }
 0x19a   :  { %1956 = vmatpush3.bf16.msra.mxu0 %v2153_v55 }
 0x19b   :  { %1999 = vmatprep.subr.bf16.mxu0 %v2352_v0 }
 0x258   :  { %v384_v57 = vpop.f32.mrb[0].mxu1 }
 0x259   :  { %v385_v58 = vadd.f32 %v1703_v56, %v384_v57  ;;  %v1931_v59 = vpop.f32.mrb[1].mxu1  ;;  %v408_v57 = vld [vmem:[#allocation8 + $0x5] sm:$0x1] }
 0x25a   :  { %v387_v60 = vpop.f32.mrb[2].mxu1 }
 0x25b   :  { %v2502_v61 = vmax.f32 %v385_v58, 0.0  ;;  %v388_v62 = vadd.f32 %v1703_v56, %v387_v60  ;;  %v1932_v63 = vpop.f32.mrb[3].mxu1 }
 0x25d   :  { %v410_v1 = vmax.f32 %v388_v62, 0.0  ;;  %v427_v2 = vmul.f32 %v2502_v61, %v2502_v61 }
 0x25f   :  { %v415_v3 = vadd.f32 %v410_v1, %v2502_v61  ;;  %v428_v4 = vmul.f32 %v410_v1, %v410_v1 }
 0x260   :  { %v392_v5 = vpop.f32.mrb[4].mxu1 }
 0x261   :  { %v433_v6 = vadd.f32 %v428_v4, %v427_v2  ;;  %v393_v7 = vadd.f32 %v1703_v56, %v392_v5  ;;  %v1935_v8 = vpop.f32.mrb[5].mxu1 }
 0x262   :  { %v395_v9 = vpop.f32.mrb[6].mxu1 }
 0x263   :  { %v411_v10 = vmax.f32 %v393_v7, 0.0  ;;  %v396_v11 = vadd.f32 %v1703_v56, %v395_v9  ;;  %v1936_v12 = vpop.f32.mrb[7].mxu1 }
 0x265   :  { %v416_v13 = vadd.f32 %v415_v3, %v411_v10  ;;  %v429_v14 = vmul.f32 %v411_v10, %v411_v10  ;;  %v412_v15 = vmax.f32 %v396_v11, 0.0 }
 0x267   :  { %v434_v16 = vadd.f32 %v433_v6, %v429_v14  ;;  %v417_v17 = vadd.f32 %v416_v13, %v412_v15  ;;  %v430_v18 = vmul.f32 %v412_v15, %v412_v15 }
 0x268   :  { %v400_v19 = vpop.f32.mrb[8].mxu1 }
 0x269   :  { %v435_v20 = vadd.f32 %v434_v16, %v430_v18  ;;  %v401_v21 = vadd.f32 %v1703_v56, %v400_v19  ;;  %v1939_v22 = vpop.f32.mrb[9].mxu1 }
 0x26a   :  { %v403_v24 = vpop.f32.mrb[10].mxu1 }
 0x26b   :  { %v413_v26 = vmax.f32 %v401_v21, 0.0  ;;  %v404_v27 = vadd.f32 %v1703_v56, %v403_v24  ;;  %v1940_v28 = vpop.f32.mrb[11].mxu1 }
 0x26d   :  { %v418_v29 = vadd.f32 %v417_v17, %v413_v26  ;;  %v431_v30 = vmul.f32 %v413_v26, %v413_v26  ;;  %v414_v32 = vmax.f32 %v404_v27, 0.0 }
 0x26f   :  { %v436_v33 = vadd.f32 %v435_v20, %v431_v30  ;;  %v419_v35 = vadd.f32 %v418_v29, %v414_v32  ;;  %v432_v36 = vmul.f32 %v414_v32, %v414_v32 }
 0x271   :  { %v420_v37 = vrot.slane %v419_v35, 4  ;;  %v437_v38 = vadd.f32 %v436_v33, %v432_v36 }
 0x273   :  { %v421_v39 = vadd.f32 %v420_v37, %v419_v35  ;;  %v438_v40 = vrot.slane %v437_v38, 4 }
 0x275   :  { %v422_v41 = vrot.slane %v421_v39, 2  ;;  %v439_v42 = vadd.f32 %v438_v40, %v437_v38 }
 0x277   :  { %v423_v44 = vadd.f32 %v422_v41, %v421_v39  ;;  %v440_v45 = vrot.slane %v439_v42, 2 }
 0x279   :  { %v424_v46 = vrot.slane %v423_v44, 1  ;;  %v441_v47 = vadd.f32 %v440_v45, %v439_v42 }
 0x27b   :  { %v425_v49 = vadd.f32 %v424_v46, %v423_v44  ;;  %v442_v50 = vrot.slane %v441_v47, 1 }
 0x27d   :  { %v426_v51 = vmul.f32 0.020833334, %v425_v49  ;;  %v443_v31 = vadd.f32 %v442_v50, %v441_v47 }
 0x27f   :  { %v444_v34 = vmul.f32 0.020833334, %v443_v31  ;;  %v445_v43 = vmul.f32 %v426_v51, %v426_v51 }
 0x281   :  { %v446_v48 = vsub.f32 %v444_v34, %v445_v43 }
 0x283   :  { %v447_v52 = vmax.f32 %v446_v48, 0.0 }
 0x285   :  { %v448_v53 = vadd.f32 1e-05, %v447_v52 }
 0x287   :  { %2212 = vrsqrt.f32 %v448_v53 }
 0x291   :  { %v2213_v55 = vpop.eup %2212 }
 0x292   :  { %v450_v56 = vmul.f32 %v2213_v55, %v407_v54 }
 0x294   :  { %v451_v58 = vmul.f32 %v450_v56, %v426_v51  ;;  %v456_v59 = vrot.slane %v450_v56, %v2482_v25 }
 0x296   :  { %v452_v60 = vsub.f32 %v408_v57, %v451_v58  ;;  %v462_v62 = vmul.f32 %v456_v59, %v414_v32  ;;  %v457_v63 = vmul.f32 %v456_v59, %v2502_v61  ;;  %v458_v2 = vmul.f32 %v456_v59, %v410_v1  ;;  %v1712_v61 = vld [vmem:[#allocation8 + $0x6] ss:$0 sm:$0xff] }
 0x297   :  { %v459_v3 = vmul.f32 %v456_v59, %v411_v10  ;;  %v460_v4 = vmul.f32 %v456_v59, %v412_v15  ;;  %v461_v5 = vmul.f32 %v456_v59, %v413_v26 }
 0x298   :  { %v466_v6 = vrot.slane %v452_v60, %v2482_v25 }
 0x29a   :  { %v467_v7 = vadd.f32 %v466_v6, %v457_v63  ;;  %v468_v8 = vadd.f32 %v466_v6, %v458_v2  ;;  %v469_v9 = vadd.f32 %v466_v6, %v459_v3  ;;  %v470_v11 = vadd.f32 %v466_v6, %v460_v4 }
 0x29b   :  { %v471_v12 = vadd.f32 %v466_v6, %v461_v5  ;;  %v472_v13 = vadd.f32 %v466_v6, %v462_v62 }
 0x29c   :  { %v490_v14 = vpack.c.bf16 %v468_v8, %v467_v7  ;;  %v491_v16 = vpack.c.bf16 %v470_v11, %v469_v9 }
 0x29d   :  { %v492_v17 = vpack.c.bf16 %v472_v13, %v471_v12 }
 0x29e   :  { %1958 = vmatmul.mubr.bf16.vlgmr.msra.gmra.mrb[12].mxu0 %v490_v14 }
 0x29f   :  { %1961 = vmatprep.mubr.msk.bf16.mxu0 %vm2353_vm0, %v2352_v0 }
 0x2a6   :  { %1962 = vmatmul.mubr.bf16.gmra.mrb[16].mxu0 %v491_v16  ;;  %v602_v16 = vld [vmem:[#allocation8 + $0x7] sm:$0x1] }
 0x2a7   :  { %1965 = vmatprep.mubr.msk.bf16.mxu0 %vm2353_vm0, %v2352_v0 }
 0x2ae   :  { %1966 = vmatmul.mubr.bf16.gmra.mrb[20].mxu0 %v492_v17 }
 0x2af   :  { %2015 = vmatprep.mubr.msk.bf16.mxu0 %vm2353_vm0, %v2352_v0 }
 0x371   :  { %v579_v1 = vpop.f32.mrb[12].mxu0 }
 0x372   :  { %v580_v10 = vadd.f32 %v1712_v61, %v579_v1  ;;  %v1959_v15 = vpop.f32.mrb[13].mxu0  ;;  %v603_v1 = vld [vmem:[#allocation8 + $0x8] sm:$0x1] }
 0x373   :  { %v582_v18 = vpop.f32.mrb[14].mxu0 }
 0x374   :  { %v2516_v19 = vmax.f32 %v580_v10, 0.0  ;;  %v583_v20 = vadd.f32 %v1712_v61, %v582_v18  ;;  %v1960_v21 = vpop.f32.mrb[15].mxu0 }
 0x376   :  { %v605_v22 = vmax.f32 %v583_v20, 0.0  ;;  %v622_v24 = vmul.f32 %v2516_v19, %v2516_v19 }
 0x378   :  { %v610_v26 = vadd.f32 %v605_v22, %v2516_v19  ;;  %v623_v27 = vmul.f32 %v605_v22, %v605_v22 }
 0x379   :  { %v587_v28 = vpop.f32.mrb[16].mxu0 }
 0x37a   :  { %v628_v29 = vadd.f32 %v623_v27, %v622_v24  ;;  %v588_v30 = vadd.f32 %v1712_v61, %v587_v28  ;;  %v1963_v32 = vpop.f32.mrb[17].mxu0 }
 0x37b   :  { %v590_v33 = vpop.f32.mrb[18].mxu0 }
 0x37c   :  { %v606_v35 = vmax.f32 %v588_v30, 0.0  ;;  %v591_v36 = vadd.f32 %v1712_v61, %v590_v33  ;;  %v1964_v37 = vpop.f32.mrb[19].mxu0 }
 0x37e   :  { %v611_v38 = vadd.f32 %v610_v26, %v606_v35  ;;  %v624_v39 = vmul.f32 %v606_v35, %v606_v35  ;;  %v607_v40 = vmax.f32 %v591_v36, 0.0 }
 0x380   :  { %v629_v41 = vadd.f32 %v628_v29, %v624_v39  ;;  %v612_v42 = vadd.f32 %v611_v38, %v607_v40  ;;  %v625_v44 = vmul.f32 %v607_v40, %v607_v40 }
 0x381   :  { %v595_v45 = vpop.f32.mrb[20].mxu0 }
 0x382   :  { %v630_v46 = vadd.f32 %v629_v41, %v625_v44  ;;  %v596_v47 = vadd.f32 %v1712_v61, %v595_v45  ;;  %v1967_v49 = vpop.f32.mrb[21].mxu0  ;;  %v2157_v44 = vld [vmem:[#allocation7 + $0xd8] sm:$0xff]   ;;  %v2158_v45 = vld [vmem:[#allocation7 + $0xe0] sm:$0xff]  }
 0x383   :  { %v598_v50 = vpop.f32.mrb[22].mxu0  ;;  %v2161_v49 = vld [vmem:[#allocation7 + $0xf8] sm:$0xff]  }
 0x384   :  { %v608_v51 = vmax.f32 %v596_v47, 0.0  ;;  %v599_v31 = vadd.f32 %v1712_v61, %v598_v50  ;;  %v1968_v34 = vpop.f32.mrb[23].mxu0  ;;  %v2160_v47 = vld [vmem:[#allocation7 + $0xf0] sm:$0xff]  }
 0x386   :  { %v613_v43 = vadd.f32 %v612_v42, %v608_v51  ;;  %v626_v48 = vmul.f32 %v608_v51, %v608_v51  ;;  %v609_v52 = vmax.f32 %v599_v31, 0.0 }
 0x388   :  { %v631_v53 = vadd.f32 %v630_v46, %v626_v48  ;;  %v614_v54 = vadd.f32 %v613_v43, %v609_v52  ;;  %v627_v55 = vmul.f32 %v609_v52, %v609_v52  ;;  %v2159_v46 = vld [vmem:[#allocation7 + $0xe8] sm:$0xff]  }
 0x38a   :  { %v615_v56 = vrot.slane %v614_v54, 4  ;;  %v632_v57 = vadd.f32 %v631_v53, %v627_v55  ;;  %v2163_v53 = vld [vmem:[#allocation7 + $0x108] sm:$0xff]   ;;  %v2165_v55 = vld [vmem:[#allocation7 + $0x118] sm:$0xff]  }
 0x38c   :  { %v616_v58 = vadd.f32 %v615_v56, %v614_v54  ;;  %v633_v59 = vrot.slane %v632_v57, 4  ;;  %v2164_v54 = vld [vmem:[#allocation7 + $0x110] sm:$0xff]   ;;  %v2166_v56 = vld [vmem:[#allocation7 + $0x120] sm:$0xff]  }
 0x38e   :  { %v617_v60 = vrot.slane %v616_v58, 2  ;;  %v634_v62 = vadd.f32 %v633_v59, %v632_v57  ;;  %v2167_v57 = vld [vmem:[#allocation7 + $0x128] sm:$0xff]   ;;  %v2169_v59 = vld [vmem:[#allocation7 + $0x138] sm:$0xff]  }
 0x390   :  { %v618_v63 = vadd.f32 %v617_v60, %v616_v58  ;;  %v635_v2 = vrot.slane %v634_v62, 2  ;;  %v2168_v58 = vld [vmem:[#allocation7 + $0x130] sm:$0xff]   ;;  %v1722_v60 = vld [vmem:[#allocation8 + $0x9] ss:$0 sm:$0xff] }
 0x392   :  { %v619_v3 = vrot.slane %v618_v63, 1  ;;  %v636_v4 = vadd.f32 %v635_v2, %v634_v62 }
 0x394   :  { %v620_v5 = vadd.f32 %v619_v3, %v618_v63  ;;  %v637_v6 = vrot.slane %v636_v4, 1  ;;  %v2549_v3 = vsel %vm74_vm2, 1.0, %v2352_v0 }
 0x396   :  { %v621_v7 = vmul.f32 0.020833334, %v620_v5  ;;  %v638_v8 = vadd.f32 %v637_v6, %v636_v4 }
 0x398   :  { %v639_v9 = vmul.f32 0.020833334, %v638_v8  ;;  %v640_v11 = vmul.f32 %v621_v7, %v621_v7 }
 0x39a   :  { %v641_v12 = vsub.f32 %v639_v9, %v640_v11 }
 0x39c   :  { %v642_v13 = vmax.f32 %v641_v12, 0.0 }
 0x39e   :  { %v643_v14 = vadd.f32 1e-05, %v642_v13 }
 0x3a0   :  { %2214 = vrsqrt.f32 %v643_v14 }
 0x3aa   :  { %v2215_v17 = vpop.eup %2214 }
 0x3ab   :  { %v645_v61 = vmul.f32 %v2215_v17, %v602_v16 }
 0x3ad   :  { %v646_v10 = vmul.f32 %v645_v61, %v621_v7  ;;  %v651_v15 = vrot.slane %v645_v61, %v2482_v25 }
 0x3af   :  { %v647_v18 = vsub.f32 %v603_v1, %v646_v10  ;;  %v657_v20 = vmul.f32 %v651_v15, %v609_v52  ;;  %v652_v21 = vmul.f32 %v651_v15, %v2516_v19  ;;  %v653_v24 = vmul.f32 %v651_v15, %v605_v22  ;;  %v668_v19 = vld [vmem:[#allocation5] sm:$0xf]  ;;  %v2154_v22 = vld [vmem:[#allocation7 + $0xc0] sm:$0xff]  }
 0x3b0   :  { %v654_v26 = vmul.f32 %v651_v15, %v606_v35  ;;  %v655_v27 = vmul.f32 %v651_v15, %v607_v40  ;;  %v656_v28 = vmul.f32 %v651_v15, %v608_v51  ;;  %v2155_v35 = vld [vmem:[#allocation7 + $0xc8] sm:$0xff]   ;;  %v2156_v40 = vld [vmem:[#allocation7 + $0xd0] sm:$0xff]   ;;  %v2162_v52 = vld [vmem:[#allocation7 + $0x100] sm:$0xff]  }
 0x3b1   :  { %v661_v29 = vrot.slane %v647_v18, %v2482_v25  ;;  %2000 = vmatpush3.bf16.msra.mxu0 %v2162_v52  ;;  %v1731_v52 = vld [vmem:[#allocation8 + $0xc] ss:$0 sm:$0xff] }
 0x3b2   :  { %2001 = vmatprep.subr.bf16.mxu0 %v2352_v0 }
 0x3b3   :  { %v667_v30 = vadd.f32 %v661_v29, %v657_v20  ;;  %v662_v32 = vadd.f32 %v661_v29, %v652_v21  ;;  %v663_v33 = vadd.f32 %v661_v29, %v653_v24  ;;  %v664_v36 = vadd.f32 %v661_v29, %v654_v26 }
 0x3b4   :  { %v665_v37 = vadd.f32 %v661_v29, %v655_v27  ;;  %v666_v38 = vadd.f32 %v661_v29, %v656_v28  ;;  %v827_v28 = vld [vmem:[#allocation8 + $0xa] sm:$0x1] }
 0x3b5   :  { %v669_v39 = vpack.c.bf16 %v663_v33, %v662_v32  ;;  %2002 = vmatpush3.bf16.msra.mxu0 %v2163_v53  ;;  %v828_v32 = vld [vmem:[#allocation8 + $0xb] sm:$0x1] }
 0x3b6   :  { %v670_v41 = vpack.c.bf16 %v665_v37, %v664_v36  ;;  %v671_v42 = vpack.c.bf16 %v667_v30, %v666_v38  ;;  %2003 = vmatprep.subr.bf16.mxu0 %v2352_v0 }
 0x3b7   :  { %1970 = vmatpush3.bf16.msra.mxu1 %v669_v39 }
 0x3b8   :  { %1971 = vmatprep.subr.bf16.mxu1 %v2352_v0 }
 0x3b9   :  { %2004 = vmatpush3.bf16.msra.mxu0 %v2164_v54 }
 0x3ba   :  { %2005 = vmatprep.subr.bf16.mxu0 %v2352_v0 }
 0x3bb   :  { %1972 = vmatpush3.bf16.msra.mxu1 %v670_v41 }
 0x3bc   :  { %1973 = vmatprep.subr.bf16.mxu1 %v2352_v0 }
 0x3bd   :  { %2006 = vmatpush3.bf16.msra.mxu0 %v2165_v55 }
 0x3be   :  { %2007 = vmatprep.subr.bf16.mxu0 %v2352_v0 }
 0x3bf   :  { %1974 = vmatpush3.bf16.msra.mxu1 %v671_v42 }
 0x3c0   :  { %1979 = vmatprep.subr.bf16.mxu1 %v2352_v0 }
 0x3c1   :  { %2008 = vmatpush3.bf16.msra.mxu0 %v2166_v56 }
 0x3c2   :  { %1976 = vmatmul.mubr.msk.bf16.vlgmr.msra.gmra.mrb[12].mxu1 %vm672_vm1, %v668_v19  ;;  %2009 = vmatprep.subr.bf16.mxu0 %v2352_v0  ;;  %v2170_v19 = vld [vmem:[#allocation7 + $0x140] sm:$0xff]  }
 0x3c3   :  { %1980 = vmatpush3.bf16.msra.mxu1 %v2154_v22  ;;  %1995 = vmatprep.mubr.msk.bf16.mxu1 %vm2353_vm0, %v2352_v0  ;;  %v2171_v22 = vld [vmem:[#allocation7 + $0x148] sm:$0xff]  }
 0x3c4   :  { %1981 = vmatprep.subr.bf16.mxu1 %v2352_v0 }
 0x3c5   :  { %2010 = vmatpush3.bf16.msra.mxu0 %v2167_v57 }
 0x3c6   :  { %2011 = vmatprep.subr.bf16.mxu0 %v2352_v0 }
 0x3c7   :  { %1982 = vmatpush3.bf16.msra.mxu1 %v2155_v35  ;;  %v2172_v35 = vld [vmem:[#allocation7 + $0x150] sm:$0xff]  }
 0x3c8   :  { %1983 = vmatprep.subr.bf16.mxu1 %v2352_v0 }
 0x3c9   :  { %2012 = vmatpush3.bf16.msra.mxu0 %v2168_v58 }
 0x3ca   :  { %2013 = vmatprep.subr.bf16.mxu0 %v2352_v0 }
 0x3cb   :  { %1984 = vmatpush3.bf16.msra.mxu1 %v2156_v40  ;;  %v2173_v40 = vld [vmem:[#allocation7 + $0x158] sm:$0xff]  }
 0x3cc   :  { %1985 = vmatprep.subr.bf16.mxu1 %v2352_v0 }
 0x3cd   :  { %2014 = vmatpush3.bf16.msra.mxu0 %v2169_v59 }
 0x3ce   :  { %2039 = vmatprep.subr.bf16.mxu0 %v2352_v0 }
 0x3cf   :  { %1986 = vmatpush3.bf16.msra.mxu1 %v2157_v44  ;;  %v2174_v44 = vld [vmem:[#allocation7 + $0x160] sm:$0xff]  }
 0x3d0   :  { %1987 = vmatprep.subr.bf16.mxu1 %v2352_v0 }
 0x3d3   :  { %1988 = vmatpush3.bf16.msra.mxu1 %v2158_v45  ;;  %v2175_v45 = vld [vmem:[#allocation7 + $0x168] sm:$0xff]  }
 0x3d4   :  { %1989 = vmatprep.subr.bf16.mxu1 %v2352_v0 }
 0x3d7   :  { %1990 = vmatpush3.bf16.msra.mxu1 %v2159_v46  ;;  %v2176_v46 = vld [vmem:[#allocation7 + $0x170] sm:$0xff]  }
 0x3d8   :  { %1991 = vmatprep.subr.bf16.mxu1 %v2352_v0 }
 0x3db   :  { %1992 = vmatpush3.bf16.msra.mxu1 %v2160_v47  ;;  %v2177_v47 = vld [vmem:[#allocation7 + $0x178] sm:$0xff]  }
 0x3dc   :  { %1993 = vmatprep.subr.bf16.mxu1 %v2352_v0 }
 0x3df   :  { %1994 = vmatpush3.bf16.msra.mxu1 %v2161_v49  ;;  %v2178_v49 = vld [vmem:[#allocation7 + $0x180] sm:$0xff]  }
 0x3e0   :  { %2019 = vmatprep.subr.bf16.mxu1 %v2352_v0 }
 0x495   :  { %v710_v50 = vpop.f32.mrb[12].mxu1 }
 0x496   :  { %v716_v51 = vmul.f32 0.125, %v710_v50  ;;  %v1977_v31 = vpop.f32.mrb[13].mxu1  ;;  %v2179_v50 = vld [vmem:[#allocation7 + $0x188] sm:$0xff]  }
 0x497   :  { %v713_v34 = vpop.f32.mrb[14].mxu1  ;;  %v2181_v31 = vld [vmem:[#allocation7 + $0x198] sm:$0xff]  }
 0x498   :  { %v734_v43 = vpack.c.bf16 %v716_v51, %v716_v51  ;;  %v1978_v48 = vpop.f32.mrb[15].mxu1  ;;  %v2180_v51 = vld [vmem:[#allocation7 + $0x190] sm:$0xff]   ;;  %v2182_v34 = vld [vmem:[#allocation7 + $0x1a0] sm:$0xff]  }
 0x499   :  { %v2184_v48 = vld [vmem:[#allocation7 + $0x1b0] sm:$0xff]  }
 0x49a   :  { %1996 = vmatmul.mubr.bf16.vlgmr.msra.gmra.mrb[16].mxu1 %v734_v43  ;;  %v2183_v43 = vld [vmem:[#allocation7 + $0x1a8] sm:$0xff]  }
 0x49b   :  { %2035 = vmatprep.mubr.msk.bf16.mxu1 %vm2353_vm0, %v2352_v0  ;;  %2020 = vmatpush3.bf16.msra.mxu1 %v2170_v19  ;;  %v2186_v19 = vld [vmem:[#allocation7 + $0x1c0] sm:$0xff]  }
 0x49c   :  { %2021 = vmatprep.subr.bf16.mxu1 %v2352_v0 }
 0x49f   :  { %2022 = vmatpush3.bf16.msra.mxu1 %v2171_v22  ;;  %v2187_v22 = vld [vmem:[#allocation7 + $0x1c8] sm:$0xff]  }
 0x4a0   :  { %2023 = vmatprep.subr.bf16.mxu1 %v2352_v0 }
 0x4a3   :  { %2024 = vmatpush3.bf16.msra.mxu1 %v2172_v35  ;;  %v2188_v35 = vld [vmem:[#allocation7 + $0x1d0] sm:$0xff]  }
 0x4a4   :  { %2025 = vmatprep.subr.bf16.mxu1 %v2352_v0 }
 0x4a7   :  { %2026 = vmatpush3.bf16.msra.mxu1 %v2173_v40  ;;  %v2189_v40 = vld [vmem:[#allocation7 + $0x1d8] sm:$0xff]  }
 0x4a8   :  { %2027 = vmatprep.subr.bf16.mxu1 %v2352_v0 }
 0x4ab   :  { %2028 = vmatpush3.bf16.msra.mxu1 %v2174_v44  ;;  %v2190_v44 = vld [vmem:[#allocation7 + $0x1e0] sm:$0xff]  }
 0x4ac   :  { %2029 = vmatprep.subr.bf16.mxu1 %v2352_v0 }
 0x4af   :  { %2030 = vmatpush3.bf16.msra.mxu1 %v2175_v45  ;;  %v2191_v45 = vld [vmem:[#allocation7 + $0x1e8] sm:$0xff]  }
 0x4b0   :  { %2031 = vmatprep.subr.bf16.mxu1 %v2352_v0 }
 0x4b3   :  { %2032 = vmatpush3.bf16.msra.mxu1 %v2176_v46  ;;  %v2192_v46 = vld [vmem:[#allocation7 + $0x1f0] sm:$0xff]  }
 0x4b4   :  { %2033 = vmatprep.subr.bf16.mxu1 %v2352_v0 }
 0x4b7   :  { %2034 = vmatpush3.bf16.msra.mxu1 %v2177_v47  ;;  %v2193_v47 = vld [vmem:[#allocation7 + $0x1f8] sm:$0xff]  }
 0x4b8   :  { %2059 = vmatprep.subr.bf16.mxu1 %v2352_v0 }
 0x56d   :  { %v821_v62 = vpop.f32.mrb[16].mxu1 }
 0x56e   :  { %v822_v63 = vadd.f32 %v1722_v60, %v821_v62  ;;  %v1997_v2 = vpop.f32.mrb[17].mxu1 }
 0x56f   :  { %v824_v4 = vpop.f32.mrb[18].mxu1 }
 0x570   :  { %v829_v5 = vmax.f32 %v822_v63, 0.0  ;;  %v1998_v6 = vpop.f32.mrb[19].mxu1 }
 0x572   :  { %v830_v7 = vmul.f32 %v2549_v3, %v829_v5 }
 0x574   :  { %v831_v8 = vrot.slane %v830_v7, 4  ;;  %v838_v9 = vmul.f32 %v830_v7, %v830_v7 }
 0x576   :  { %v832_v11 = vadd.f32 %v831_v8, %v830_v7  ;;  %v839_v12 = vrot.slane %v838_v9, 4 }
 0x578   :  { %v833_v13 = vrot.slane %v832_v11, 2  ;;  %v840_v14 = vadd.f32 %v839_v12, %v838_v9 }
 0x57a   :  { %v834_v16 = vadd.f32 %v833_v13, %v832_v11  ;;  %v841_v17 = vrot.slane %v840_v14, 2 }
 0x57c   :  { %v835_v23 = vrot.slane %v834_v16, 1  ;;  %v842_v61 = vadd.f32 %v841_v17, %v840_v14 }
 0x57e   :  { %v836_v1 = vadd.f32 %v835_v23, %v834_v16  ;;  %v843_v10 = vrot.slane %v842_v61, 1 }
 0x580   :  { %v837_v15 = vmul.f32 0.16666667, %v836_v1  ;;  %v844_v18 = vadd.f32 %v843_v10, %v842_v61  ;;  %v974_v10 = vld [vmem:[#allocation8 + $0xd] sm:$0x1] }
 0x582   :  { %v845_v20 = vmul.f32 0.16666667, %v844_v18  ;;  %v846_v21 = vmul.f32 %v837_v15, %v837_v15 }
 0x584   :  { %v847_v24 = vsub.f32 %v845_v20, %v846_v21  ;;  %v975_v20 = vld [vmem:[#allocation8 + $0xe] sm:$0x1] }
 0x586   :  { %v848_v26 = vmax.f32 %v847_v24, 0.0 }
 0x588   :  { %v849_v27 = vadd.f32 1e-05, %v848_v26 }
 0x58a   :  { %2216 = vrsqrt.f32 %v849_v27 }
 0x594   :  { %v2217_v29 = vpop.eup %2216 }
 0x595   :  { %v851_v30 = vmul.f32 %v2217_v29, %v827_v28 }
 0x597   :  { %v852_v33 = vmul.f32 %v851_v30, %v837_v15  ;;  %v857_v36 = vrot.slane %v851_v30, %v2482_v25 }
 0x599   :  { %v853_v37 = vsub.f32 %v828_v32, %v852_v33  ;;  %v858_v38 = vmul.f32 %v857_v36, %v829_v5  ;;  %v2185_v32 = vld [vmem:[#allocation7 + $0x1b8] sm:$0xff]   ;;  %v1740_v33 = vld [vmem:[#allocation8 + $0xf] ss:$0 sm:$0xff] }
 0x59b   :  { %v862_v39 = vrot.slane %v853_v37, %v2482_v25 }
 0x59d   :  { %v863_v41 = vadd.f32 %v862_v39, %v858_v38 }
 0x59f   :  { %v881_v42 = vpack.c.bf16 %v863_v41, %v863_v41 }
 0x5a1   :  { %2016 = vmatmul.mubr.bf16.vlgmr.msra.gmra.mrb[24].mxu0 %v881_v42 }
 0x5a2   :  { %2055 = vmatprep.mubr.msk.bf16.mxu0 %vm2353_vm0, %v2352_v0  ;;  %2040 = vmatpush3.bf16.msra.mxu0 %v2178_v49  ;;  %v1749_v49 = vld [vmem:[#allocation8 + $0x12] ss:$0 sm:$0xff] }
 0x5a3   :  { %2041 = vmatprep.subr.bf16.mxu0 %v2352_v0 }
 0x5a6   :  { %2042 = vmatpush3.bf16.msra.mxu0 %v2179_v50 }
 0x5a7   :  { %2043 = vmatprep.subr.bf16.mxu0 %v2352_v0 }
 0x5aa   :  { %2044 = vmatpush3.bf16.msra.mxu0 %v2180_v51 }
 0x5ab   :  { %2045 = vmatprep.subr.bf16.mxu0 %v2352_v0 }
 0x5ae   :  { %2046 = vmatpush3.bf16.msra.mxu0 %v2181_v31 }
 0x5af   :  { %2047 = vmatprep.subr.bf16.mxu0 %v2352_v0 }
 0x5b2   :  { %2048 = vmatpush3.bf16.msra.mxu0 %v2182_v34 }
 0x5b3   :  { %2049 = vmatprep.subr.bf16.mxu0 %v2352_v0 }
 0x5b6   :  { %2050 = vmatpush3.bf16.msra.mxu0 %v2183_v43 }
 0x5b7   :  { %2051 = vmatprep.subr.bf16.mxu0 %v2352_v0 }
 0x5ba   :  { %2052 = vmatpush3.bf16.msra.mxu0 %v2184_v48 }
 0x5bb   :  { %2053 = vmatprep.subr.bf16.mxu0 %v2352_v0 }
 0x5be   :  { %2054 = vmatpush3.bf16.msra.mxu0 %v2185_v32  ;;  %v2201_v32 = vld [vmem:[#allocation7 + $0x238] sm:$0xff]  }
 0x5bf   :  { %2079 = vmatprep.subr.bf16.mxu0 %v2352_v0 }
 0x674   :  { %v968_v53 = vpop.f32.mrb[24].mxu0 }
 0x675   :  { %v969_v54 = vadd.f32 %v1731_v52, %v968_v53  ;;  %v2017_v55 = vpop.f32.mrb[25].mxu0 }
 0x676   :  { %v971_v56 = vpop.f32.mrb[26].mxu0 }
 0x677   :  { %v976_v57 = vmax.f32 %v969_v54, 0.0  ;;  %v2018_v58 = vpop.f32.mrb[27].mxu0 }
 0x679   :  { %v977_v59 = vmul.f32 %v2549_v3, %v976_v57 }
 0x67b   :  { %v978_v60 = vrot.slane %v977_v59, 4  ;;  %v985_v62 = vmul.f32 %v977_v59, %v977_v59 }
 0x67d   :  { %v979_v63 = vadd.f32 %v978_v60, %v977_v59  ;;  %v986_v2 = vrot.slane %v985_v62, 4 }
 0x67f   :  { %v980_v4 = vrot.slane %v979_v63, 2  ;;  %v987_v5 = vadd.f32 %v986_v2, %v985_v62 }
 0x681   :  { %v981_v6 = vadd.f32 %v980_v4, %v979_v63  ;;  %v988_v7 = vrot.slane %v987_v5, 2 }
 0x683   :  { %v982_v8 = vrot.slane %v981_v6, 1  ;;  %v989_v9 = vadd.f32 %v988_v7, %v987_v5 }
 0x685   :  { %v983_v11 = vadd.f32 %v982_v8, %v981_v6  ;;  %v990_v12 = vrot.slane %v989_v9, 1 }
 0x687   :  { %v984_v13 = vmul.f32 0.16666667, %v983_v11  ;;  %v991_v14 = vadd.f32 %v990_v12, %v989_v9 }
 0x689   :  { %v992_v16 = vmul.f32 0.16666667, %v991_v14  ;;  %v993_v17 = vmul.f32 %v984_v13, %v984_v13 }
 0x68b   :  { %v994_v23 = vsub.f32 %v992_v16, %v993_v17  ;;  %v1232_v17 = vld [vmem:[#allocation8 + $0x14] sm:$0x1] }
 0x68d   :  { %v995_v61 = vmax.f32 %v994_v23, 0.0 }
 0x68f   :  { %v996_v1 = vadd.f32 1e-05, %v995_v61 }
 0x691   :  { %2218 = vrsqrt.f32 %v996_v1 }
 0x69b   :  { %v2219_v15 = vpop.eup %2218 }
 0x69c   :  { %v998_v18 = vmul.f32 %v2219_v15, %v974_v10 }
 0x69e   :  { %v999_v21 = vmul.f32 %v998_v18, %v984_v13  ;;  %v1004_v24 = vrot.slane %v998_v18, %v2482_v25  ;;  %v1231_v13 = vld [vmem:[#allocation8 + $0x13] sm:$0x1] }
 0x6a0   :  { %v1000_v26 = vsub.f32 %v975_v20, %v999_v21  ;;  %v1005_v27 = vmul.f32 %v1004_v24, %v976_v57  ;;  %v2194_v21 = vld [vmem:[#allocation7 + $0x200] sm:$0xff]   ;;  %v2195_v24 = vld [vmem:[#allocation7 + $0x208] sm:$0xff]  }
 0x6a2   :  { %v1009_v28 = vrot.slane %v1000_v26, %v2482_v25  ;;  %v2196_v26 = vld [vmem:[#allocation7 + $0x210] sm:$0xff]  }
 0x6a4   :  { %v1010_v29 = vadd.f32 %v1009_v28, %v1005_v27  ;;  %v2197_v27 = vld [vmem:[#allocation7 + $0x218] sm:$0xff]   ;;  %v2198_v28 = vld [vmem:[#allocation7 + $0x220] sm:$0xff]  }
 0x6a6   :  { %v1028_v30 = vpack.c.bf16 %v1010_v29, %v1010_v29  ;;  %v2199_v29 = vld [vmem:[#allocation7 + $0x228] sm:$0xff]  }
 0x6a8   :  { %2036 = vmatmul.mubr.bf16.vlgmr.msra.gmra.mrb[20].mxu1 %v1028_v30  ;;  %v2200_v30 = vld [vmem:[#allocation7 + $0x230] sm:$0xff]  }
 0x6a9   :  { %2075 = vmatprep.mubr.msk.bf16.mxu1 %vm2353_vm0, %v2352_v0  ;;  %2060 = vmatpush3.bf16.msra.mxu1 %v2186_v19 }
 0x6aa   :  { %2061 = vmatprep.subr.bf16.mxu1 %v2352_v0 }
 0x6ad   :  { %2062 = vmatpush3.bf16.msra.mxu1 %v2187_v22 }
 0x6ae   :  { %2063 = vmatprep.subr.bf16.mxu1 %v2352_v0 }
 0x6b1   :  { %2064 = vmatpush3.bf16.msra.mxu1 %v2188_v35 }
 0x6b2   :  { %2065 = vmatprep.subr.bf16.mxu1 %v2352_v0 }
 0x6b5   :  { %2066 = vmatpush3.bf16.msra.mxu1 %v2189_v40 }
 0x6b6   :  { %2067 = vmatprep.subr.bf16.mxu1 %v2352_v0 }
 0x6b9   :  { %2068 = vmatpush3.bf16.msra.mxu1 %v2190_v44 }
 0x6ba   :  { %2069 = vmatprep.subr.bf16.mxu1 %v2352_v0 }
 0x6bd   :  { %2070 = vmatpush3.bf16.msra.mxu1 %v2191_v45 }
 0x6be   :  { %2071 = vmatprep.subr.bf16.mxu1 %v2352_v0 }
 0x6c1   :  { %2072 = vmatpush3.bf16.msra.mxu1 %v2192_v46 }
 0x6c2   :  { %2073 = vmatprep.subr.bf16.mxu1 %v2352_v0 }
 0x6c5   :  { %2074 = vmatpush3.bf16.msra.mxu1 %v2193_v47 }
 0x6c6   :  { %2099 = vmatprep.subr.bf16.mxu1 %v2352_v0 }
 0x77b   :  { %v1115_v36 = vpop.f32.mrb[20].mxu1 }
 0x77c   :  { %v1116_v37 = vadd.f32 %v1740_v33, %v1115_v36  ;;  %v2037_v38 = vpop.f32.mrb[21].mxu1  ;;  %v1758_v33 = vld [vmem:[#allocation8 + $0x15] ss:$0 sm:$0xff] }
 0x77d   :  { %v1118_v39 = vpop.f32.mrb[22].mxu1 }
 0x77e   :  { %v1138_v41 = vpack.c.bf16 %v1116_v37, %v1116_v37  ;;  %1672 = vst [vmem:[#allocation10] sm:$0xff] %v1116_v37  ;;  %v2038_v42 = vpop.f32.mrb[23].mxu1 }
 0x780   :  { %2056 = vmatmul.mubr.bf16.vlgmr.msra.gmra.mrb[28].mxu0 %v1138_v41 }
 0x781   :  { %2095 = vmatprep.mubr.msk.bf16.mxu0 %vm2353_vm0, %v2352_v0  ;;  %2080 = vmatpush3.bf16.msra.mxu0 %v2194_v21 }
 0x782   :  { %2081 = vmatprep.subr.bf16.mxu0 %v2352_v0 }
 0x785   :  { %2082 = vmatpush3.bf16.msra.mxu0 %v2195_v24 }
 0x786   :  { %2083 = vmatprep.subr.bf16.mxu0 %v2352_v0 }
 0x789   :  { %2084 = vmatpush3.bf16.msra.mxu0 %v2196_v26 }
 0x78a   :  { %2085 = vmatprep.subr.bf16.mxu0 %v2352_v0 }
 0x78d   :  { %2086 = vmatpush3.bf16.msra.mxu0 %v2197_v27 }
 0x78e   :  { %2087 = vmatprep.subr.bf16.mxu0 %v2352_v0 }
 0x791   :  { %2088 = vmatpush3.bf16.msra.mxu0 %v2198_v28 }
 0x792   :  { %2089 = vmatprep.subr.bf16.mxu0 %v2352_v0 }
 0x795   :  { %2090 = vmatpush3.bf16.msra.mxu0 %v2199_v29 }
 0x796   :  { %2091 = vmatprep.subr.bf16.mxu0 %v2352_v0 }
 0x799   :  { %2092 = vmatpush3.bf16.msra.mxu0 %v2200_v30 }
 0x79a   :  { %2093 = vmatprep.subr.bf16.mxu0 %v2352_v0 }
 0x79d   :  { %2094 = vmatpush3.bf16.msra.mxu0 %v2201_v32 }
 0x853   :  { %v1225_v50 = vpop.f32.mrb[28].mxu0 }
 0x854   :  { %v1226_v51 = vadd.f32 %v1749_v49, %v1225_v50  ;;  %v2057_v31 = vpop.f32.mrb[29].mxu0 }
 0x855   :  { %v1228_v34 = vpop.f32.mrb[30].mxu0 }
 0x856   :  { %v1233_v43 = vmax.f32 %v1226_v51, 0.0  ;;  %v2058_v48 = vpop.f32.mrb[31].mxu0 }
 0x858   :  { %v1234_v52 = vmul.f32 %v2549_v3, %v1233_v43 }
 0x85a   :  { %v1235_v53 = vrot.slane %v1234_v52, 4  ;;  %v1242_v54 = vmul.f32 %v1234_v52, %v1234_v52 }
 0x85c   :  { %v1236_v55 = vadd.f32 %v1235_v53, %v1234_v52  ;;  %v1243_v56 = vrot.slane %v1242_v54, 4 }
 0x85e   :  { %v1237_v57 = vrot.slane %v1236_v55, 2  ;;  %v1244_v58 = vadd.f32 %v1243_v56, %v1242_v54 }
 0x860   :  { %v1238_v59 = vadd.f32 %v1237_v57, %v1236_v55  ;;  %v1245_v60 = vrot.slane %v1244_v58, 2  ;;  %v1378_v57 = vld [vmem:[#allocation8 + $0x16] sm:$0x1] }
 0x862   :  { %v1239_v62 = vrot.slane %v1238_v59, 1  ;;  %v1246_v63 = vadd.f32 %v1245_v60, %v1244_v58  ;;  %v1379_v60 = vld [vmem:[#allocation8 + $0x17] sm:$0x1] }
 0x864   :  { %v1240_v2 = vadd.f32 %v1239_v62, %v1238_v59  ;;  %v1247_v4 = vrot.slane %v1246_v63, 1 }
 0x866   :  { %v1241_v5 = vmul.f32 0.16666667, %v1240_v2  ;;  %v1248_v6 = vadd.f32 %v1247_v4, %v1246_v63 }
 0x868   :  { %v1249_v7 = vmul.f32 0.16666667, %v1248_v6  ;;  %v1250_v8 = vmul.f32 %v1241_v5, %v1241_v5 }
 0x86a   :  { %v1251_v9 = vsub.f32 %v1249_v7, %v1250_v8  ;;  %v2202_v8 = vld [vmem:[#allocation7 + $0x240] sm:$0xff]  }
 0x86c   :  { %v1252_v11 = vmax.f32 %v1251_v9, 0.0  ;;  %v2203_v9 = vld [vmem:[#allocation7 + $0x248] sm:$0xff]  }
 0x86e   :  { %v1253_v12 = vadd.f32 1e-05, %v1252_v11  ;;  %v2204_v11 = vld [vmem:[#allocation7 + $0x250] sm:$0xff]  }
 0x870   :  { %2220 = vrsqrt.f32 %v1253_v12  ;;  %v2205_v12 = vld [vmem:[#allocation7 + $0x258] sm:$0xff]  }
 0x87a   :  { %v2221_v14 = vpop.eup %2220 }
 0x87b   :  { %v1255_v16 = vmul.f32 %v2221_v14, %v1231_v13  ;;  %v2206_v13 = vld [vmem:[#allocation7 + $0x260] sm:$0xff]   ;;  %v2207_v14 = vld [vmem:[#allocation7 + $0x268] sm:$0xff]  }
 0x87d   :  { %v1256_v23 = vmul.f32 %v1255_v16, %v1241_v5  ;;  %v1261_v61 = vrot.slane %v1255_v16, %v2482_v25  ;;  %v2208_v16 = vld [vmem:[#allocation7 + $0x270] sm:$0xff]  }
 0x87f   :  { %v1257_v1 = vsub.f32 %v1232_v17, %v1256_v23  ;;  %v1262_v10 = vmul.f32 %v1261_v61, %v1233_v43  ;;  %v2209_v17 = vld [vmem:[#allocation7 + $0x278] sm:$0xff]  }
 0x880   :  { %v1767_v23 = vld [vmem:[#allocation8 + $0x18] ss:$0 sm:$0xff] }
 0x881   :  { %v1266_v15 = vrot.slane %v1257_v1, %v2482_v25 }
 0x883   :  { %v1267_v18 = vadd.f32 %v1266_v15, %v1262_v10 }
 0x885   :  { %v1285_v20 = vpack.c.bf16 %v1267_v18, %v1267_v18 }
 0x887   :  { %2076 = vmatmul.mubr.bf16.vlgmr.msra.gmra.mrb[24].mxu1 %v1285_v20 }
 0x888   :  { %2115 = vmatprep.mubr.msk.bf16.mxu1 %vm2353_vm0, %v2352_v0  ;;  %2100 = vmatpush3.bf16.msra.mxu1 %v2202_v8 }
 0x889   :  { %2101 = vmatprep.subr.bf16.mxu1 %v2352_v0 }
 0x88c   :  { %2102 = vmatpush3.bf16.msra.mxu1 %v2203_v9 }
 0x88d   :  { %2103 = vmatprep.subr.bf16.mxu1 %v2352_v0 }
 0x890   :  { %2104 = vmatpush3.bf16.msra.mxu1 %v2204_v11 }
 0x891   :  { %2105 = vmatprep.subr.bf16.mxu1 %v2352_v0 }
 0x894   :  { %2106 = vmatpush3.bf16.msra.mxu1 %v2205_v12 }
 0x895   :  { %2107 = vmatprep.subr.bf16.mxu1 %v2352_v0 }
 0x898   :  { %2108 = vmatpush3.bf16.msra.mxu1 %v2206_v13 }
 0x899   :  { %2109 = vmatprep.subr.bf16.mxu1 %v2352_v0 }
 0x89c   :  { %2110 = vmatpush3.bf16.msra.mxu1 %v2207_v14 }
 0x89d   :  { %2111 = vmatprep.subr.bf16.mxu1 %v2352_v0 }
 0x8a0   :  { %2112 = vmatpush3.bf16.msra.mxu1 %v2208_v16 }
 0x8a1   :  { %2113 = vmatprep.subr.bf16.mxu1 %v2352_v0 }
 0x8a4   :  { %2114 = vmatpush3.bf16.msra.mxu1 %v2209_v17 }
 0x95a   :  { %v1372_v36 = vpop.f32.mrb[24].mxu1 }
 0x95b   :  { %v1373_v37 = vadd.f32 %v1758_v33, %v1372_v36  ;;  %v2077_v38 = vpop.f32.mrb[25].mxu1 }
 0x95c   :  { %v1375_v39 = vpop.f32.mrb[26].mxu1 }
 0x95d   :  { %v1380_v41 = vmax.f32 %v1373_v37, 0.0  ;;  %v2078_v42 = vpop.f32.mrb[27].mxu1 }
 0x95f   :  { %v1381_v19 = vmul.f32 %v2549_v3, %v1380_v41 }
 0x961   :  { %v1382_v22 = vrot.slane %v1381_v19, 4  ;;  %v1389_v35 = vmul.f32 %v1381_v19, %v1381_v19 }
 0x963   :  { %v1383_v40 = vadd.f32 %v1382_v22, %v1381_v19  ;;  %v1390_v44 = vrot.slane %v1389_v35, 4 }
 0x965   :  { %v1384_v45 = vrot.slane %v1383_v40, 2  ;;  %v1391_v46 = vadd.f32 %v1390_v44, %v1389_v35 }
 0x967   :  { %v1385_v47 = vadd.f32 %v1384_v45, %v1383_v40  ;;  %v1392_v49 = vrot.slane %v1391_v46, 2 }
 0x969   :  { %v1386_v50 = vrot.slane %v1385_v47, 1  ;;  %v1393_v51 = vadd.f32 %v1392_v49, %v1391_v46  ;;  %v1526_v46 = vld [vmem:[#allocation8 + $0x1a] sm:$0x1] }
 0x96b   :  { %v1387_v31 = vadd.f32 %v1386_v50, %v1385_v47  ;;  %v1394_v34 = vrot.slane %v1393_v51, 1 }
 0x96d   :  { %v1388_v43 = vmul.f32 0.16666667, %v1387_v31  ;;  %v1395_v48 = vadd.f32 %v1394_v34, %v1393_v51 }
 0x96f   :  { %v1396_v52 = vmul.f32 0.16666667, %v1395_v48  ;;  %v1397_v53 = vmul.f32 %v1388_v43, %v1388_v43  ;;  %v1776_v48 = vld [vmem:[#allocation8 + $0x1b] ss:$0 sm:$0xff] }
 0x971   :  { %v1398_v54 = vsub.f32 %v1396_v52, %v1397_v53 }
 0x973   :  { %v1399_v55 = vmax.f32 %v1398_v54, 0.0 }
 0x975   :  { %v1400_v56 = vadd.f32 1e-05, %v1399_v55 }
 0x977   :  { %2222 = vrsqrt.f32 %v1400_v56 }
 0x981   :  { %v2223_v58 = vpop.eup %2222 }
 0x982   :  { %v1402_v59 = vmul.f32 %v2223_v58, %v1378_v57 }
 0x984   :  { %v1403_v62 = vmul.f32 %v1402_v59, %v1388_v43  ;;  %v1408_v63 = vrot.slane %v1402_v59, %v2482_v25 }
 0x986   :  { %v1404_v2 = vsub.f32 %v1379_v60, %v1403_v62  ;;  %v1409_v4 = vmul.f32 %v1408_v63, %v1380_v41 }
 0x988   :  { %v1413_v5 = vrot.slane %v1404_v2, %v2482_v25 }
 0x98a   :  { %v1414_v6 = vadd.f32 %v1413_v5, %v1409_v4 }
 0x98c   :  { %v1432_v7 = vpack.c.bf16 %v1414_v6, %v1414_v6 }
 0x98e   :  { %2096 = vmatmul.mubr.bf16.vlgmr.msra.gmra.mrb[32].mxu0 %v1432_v7 }
 0xa61   :  { %v1519_v61 = vpop.f32.mrb[32].mxu0 }
 0xa62   :  { %v1520_v1 = vadd.f32 %v1767_v23, %v1519_v61  ;;  %v2097_v10 = vpop.f32.mrb[33].mxu0 }
 0xa63   :  { %v1522_v15 = vpop.f32.mrb[34].mxu0 }
 0xa64   :  { %v1527_v18 = vmax.f32 %v1520_v1, 0.0  ;;  %v2098_v20 = vpop.f32.mrb[35].mxu0 }
 0xa66   :  { %v1528_v21 = vmul.f32 %v2549_v3, %v1527_v18  ;;  %v1525_v3 = vld [vmem:[#allocation8 + $0x19] sm:$0x1] }
 0xa68   :  { %v1529_v24 = vrot.slane %v1528_v21, 4  ;;  %v1536_v26 = vmul.f32 %v1528_v21, %v1528_v21 }
 0xa6a   :  { %v1530_v27 = vadd.f32 %v1529_v24, %v1528_v21  ;;  %v1537_v28 = vrot.slane %v1536_v26, 4 }
 0xa6c   :  { %v1531_v29 = vrot.slane %v1530_v27, 2  ;;  %v1538_v30 = vadd.f32 %v1537_v28, %v1536_v26 }
 0xa6e   :  { %v1532_v32 = vadd.f32 %v1531_v29, %v1530_v27  ;;  %v1539_v33 = vrot.slane %v1538_v30, 2 }
 0xa70   :  { %v1533_v0 = vrot.slane %v1532_v32, 1  ;;  %v1540_v36 = vadd.f32 %v1539_v33, %v1538_v30 }
 0xa72   :  { %v1534_v37 = vadd.f32 %v1533_v0, %v1532_v32  ;;  %v1541_v38 = vrot.slane %v1540_v36, 1 }
 0xa74   :  { %v1535_v39 = vmul.f32 0.16666667, %v1534_v37  ;;  %v1542_v41 = vadd.f32 %v1541_v38, %v1540_v36 }
 0xa76   :  { %v1543_v42 = vmul.f32 0.16666667, %v1542_v41  ;;  %v1544_v19 = vmul.f32 %v1535_v39, %v1535_v39 }
 0xa78   :  { %v1545_v22 = vsub.f32 %v1543_v42, %v1544_v19 }
 0xa7a   :  { %v1546_v35 = vmax.f32 %v1545_v22, 0.0 }
 0xa7c   :  { %v1547_v40 = vadd.f32 1e-05, %v1546_v35 }
 0xa7e   :  { %2224 = vrsqrt.f32 %v1547_v40 }
 0xa88   :  { %v2225_v44 = vpop.eup %2224 }
 0xa89   :  { %v1549_v45 = vmul.f32 %v2225_v44, %v1525_v3 }
 0xa8b   :  { %v1550_v47 = vmul.f32 %v1549_v45, %v1535_v39  ;;  %v1555_v49 = vrot.slane %v1549_v45, %v2482_v25 }
 0xa8d   :  { %v1551_v50 = vsub.f32 %v1526_v46, %v1550_v47  ;;  %v1556_v51 = vmul.f32 %v1555_v49, %v1527_v18 }
 0xa8f   :  { %v1560_v31 = vrot.slane %v1551_v50, %v2482_v25 }
 0xa91   :  { %v1561_v34 = vadd.f32 %v1560_v31, %v1556_v51 }
 0xa93   :  { %v1579_v43 = vpack.c.bf16 %v1561_v34, %v1561_v34 }
 0xa95   :  { %2116 = vmatmul.mubr.bf16.vlgmr.msra.gmra.mrb[28].mxu1 %v1579_v43 }
 0xb68   :  { %v1666_v52 = vpop.f32.mrb[28].mxu1 }
 0xb69   :  { %v1667_v53 = vadd.f32 %v1776_v48, %v1666_v52  ;;  %v2117_v54 = vpop.f32.mrb[29].mxu1 }
 0xb6a   :  { %v1669_v55 = vpop.f32.mrb[30].mxu1 }
 0xb6b   :  { %1673 = vst [vmem:[#allocation10 + $0x8] sm:$0xff] %v1667_v53  ;;  %v2118_v56 = vpop.f32.mrb[31].mxu1 }
 0xb6c   :  { %2325 = shalt.err (!%p2322_p8)
}
 0xb6d   :  { %s2326_s17 = scalar_lea.hbm %s2631_s4, 256 }
 0xb6e   :  { %p2327_p9 = scmp.ne.s32.totalorder %s2631_s4, %s2326_s17  ;;  %p2330_p10 = scmp.lt.u32.totalorder %s2326_s17, %s2631_s4 }
 0xb70   :  { %p2332_p11 = pnand %p2330_p10, %p2327_p9 }
 0xb72   :  { %2335 = shalt.err (!%p2332_p11)
}
 0xb73   :  { %1685 = dma.vmem_to_hbm [thread:$0]  %s1680_s13, 256, %s2631_s4, [#allocation4], %s2346_s1, %s2346_s1, %s2347_s11  }
 0xb74   :  { %2342 = dma.done.wait [#allocation4], 256  }
 0xb75   :  { %2343 = vsyncadd [#allocation4], 4294967040 }
 0xb76   :  { %1689 = vsyncpa [#allocation3], 1 }
 0xb77   :  { %1690 = vsyncpa [#allocation6], 1 }
 0xb78   :  { %1691 = vsyncpa [#allocation9], 1 }
 0xb79   :  { %1692 = vsyncpa [#allocation4], 1 }

</bundles_post_ra>
